<compile_context>
chip_gen: v6e
topology: v6e:2x2x1
jax: 0.10.0
libtpu: 0.0.40
codegen_flags: <defaults>
</compile_context>

<pallas_src>
import functools

import jax
import jax.numpy as jnp
from jax.experimental import pallas as pl
from jax.experimental.pallas import tpu as pltpu


def _round_up(x, m):
    return ((x + m - 1) // m) * m


def _prep_gate_cols(w, h, hp):
    """(rows, 4*h) -> (rows, 4*hp): per-gate zero pad + 2x scale on the g gate
    (so tanh(z) can be recovered as 2*sigmoid(2z) - 1 inside the kernel)."""
    rows = w.shape[0]
    w4 = w.reshape(rows, 4, h)
    g_scale = jnp.array([1.0, 1.0, 2.0, 1.0], w.dtype).reshape(1, 4, 1)
    w4 = w4 * g_scale
    w4 = jnp.pad(w4, ((0, 0), (0, 0), (0, hp - h)))
    return w4.reshape(rows, 4 * hp)


def _lstm_chunk_kernel(maxlen_ref, pg_ref, whh_ref, len_ref,
                       out_ref, hn_ref, cn_ref,
                       h_sc, c_sc, *, hidden_pad, time_chunk, unrolled):
    """Grid = (batch_block [parallel], time_chunk [arbitrary]).

    maxlen_ref: (n_bb,)          int32  SMEM scalar-prefetch (per-block max length)
    pg_ref    : (Tc, Bb, 4*Hp)   bf16   time-major precomputed x @ W_ih^T + b
    whh_ref   : (Hp, 4*Hp)       bf16   recurrent weights (constant block)
    len_ref   : (Bb, 1)          int32  per-row valid lengths
    out_ref   : (Tc, Bb, Hp)            time-major lstm_out chunk
    hn/cn     : (Bb, Hp)         f32    written on the last time chunk only
    h_sc/c_sc : (Bb, Hp)         f32    carries, persist across grid steps
    """
    b = pl.program_id(0)
    chunk = pl.program_id(1)
    Hp = hidden_pad
    Tc = time_chunk

    @pl.when(chunk == 0)
    def _():
        h_sc[...] = jnp.zeros_like(h_sc)
        c_sc[...] = jnp.zeros_like(c_sc)

    max_len = maxlen_ref[b]
    chunk_start = chunk * Tc

    @pl.when(chunk_start >= max_len)
    def _():
        # Every row of this batch block has already finished: carry state, emit zeros.
        out_ref[...] = jnp.zeros_like(out_ref)

    @pl.when(chunk_start < max_len)
    def _():
        lens = len_ref[...]                                   # (Bb, 1) int32

        def step(j, h, c):
            # Per-step work: one (Bb,Hp)@(Hp,4Hp) recurrent matmul + gate math.
            pre = pg_ref[j].astype(jnp.float32)               # (Bb, 4Hp) dense slab
            gates = pre + jnp.dot(h.astype(jnp.bfloat16), whh_ref[...],
                                  preferred_element_type=jnp.float32)
            s = jax.nn.sigmoid(gates)                         # one EUP stream over 4Hp
            i_g = s[:, 0 * Hp:1 * Hp]
            f_g = s[:, 1 * Hp:2 * Hp]
            g_g = 2.0 * s[:, 2 * Hp:3 * Hp] - 1.0             # == tanh (g cols pre-scaled x2)
            o_g = s[:, 3 * Hp:4 * Hp]

            c_new = f_g * c + i_g * g_g
            h_new = o_g * jnp.tanh(c_new)

            # packed-sequence masking: finished rows carry state, emit zeros
            mask = lens > (chunk_start + j)                   # (Bb, 1)
            h = jnp.where(mask, h_new, h)
            c = jnp.where(mask, c_new, c)
            out_ref[j] = jnp.where(mask, h_new, 0.0).astype(out_ref.dtype)
            return h, c

        h = h_sc[...]
        c = c_sc[...]
        if unrolled:
            for j in range(Tc):                               # small Hp: full unroll
                h, c = step(j, h, c)
        else:
            # large Hp: bound vreg pressure with a partially unrolled fori_loop
            h, c = jax.lax.fori_loop(
                0, Tc, lambda j, hc: step(j, hc[0], hc[1]), (h, c), unroll=4)
        h_sc[...] = h
        c_sc[...] = c

    @pl.when(chunk == pl.num_programs(1) - 1)
    def _():
        hn_ref[...] = h_sc[...].astype(hn_ref.dtype)
        cn_ref[...] = c_sc[...].astype(cn_ref.dtype)


def lstm_all_history(x, lengths, w_ih, w_hh, b_ih, b_hh, *,
                     time_chunk=None, out_dtype=jnp.float32):
    """Forward pass of LstmAllHistory.

    x:        (B, T, D) float32, batch-first (padded equivalent of PackedSequence)
    lengths:  (B,) int32 valid lengths
    w_ih:     (4H, D), w_hh: (4H, H), b_ih/b_hh: (4H,)  (PyTorch layout, gates i,f,g,o)

    Returns (lstm_out (B,T,H), (hn (1,B,H), cn (1,B,H))).
    """
    B, T, D = x.shape
    H = w_hh.shape[1]
    f32, bf16 = jnp.float32, jnp.bfloat16

    Hp = _round_up(H, 128)                     # lane-aligned gate blocks
    Bp = _round_up(B, 8)                       # sublane-aligned batch

    # --- batch blocks: parallel grid axis (megacore on v7x; tiling knob elsewhere) ---
    Bb = Bp if Bp <= 8 else _round_up(-(-Bp // 2), 8)
    Bpt = _round_up(Bp, Bb)
    n_bb = Bpt // Bb

    # --- generation-aware VMEM budget -> time-chunk size & vmem limit ---
    out_itemsize = jnp.dtype(out_dtype).itemsize
    try:
        vmem_cap = int(pltpu.get_tpu_info().vmem_capacity_bytes)
    except Exception:
        vmem_cap = 64 * 1024 * 1024            # conservative fallback (v7x-sized)
    budget = min((vmem_cap * 3) // 4, 100 * 1024 * 1024)
    fixed = (2 * Hp * (4 * Hp) * 2             # W_hh^T (double-buffered by default)
             + 4 * Bb * Hp * 4                 # h/c carries + hn/cn blocks
             + 2 * Bb * 128 * 4)               # lengths block (tile-padded)
    per_step = Bb * (2 * (4 * Hp) * 2          # pre-gates bf16, double-buffered
                     + 2 * Hp * out_itemsize)  # out,       double-buffered
    tc_budget = max(8, (budget - fixed) // per_step)
    if time_chunk is None:
        Tc = int(min(64, tc_budget, _round_up(T, 8)))
    else:
        Tc = int(time_chunk)
    Tc = max(1, Tc)
    Tp = _round_up(T, Tc)
    n_chunks = Tp // Tc
    vmem_limit = int(min(budget + (8 << 20), vmem_cap, 128 * 1024 * 1024))

    # --- weights in MXU-friendly layout (transposed, per-gate pad, g gate x2) ---
    wih_t = _prep_gate_cols(jnp.asarray(w_ih, f32).T, H, Hp)             # (D, 4Hp)
    whh_t = _prep_gate_cols(jnp.asarray(w_hh, f32).T, H, Hp)             # (H, 4Hp)
    whh_t = jnp.pad(whh_t, ((0, Hp - H), (0, 0))).astype(bf16)           # (Hp, 4Hp)
    bias = _prep_gate_cols((jnp.asarray(b_ih, f32)
                            + jnp.asarray(b_hh, f32))[None, :], H, Hp)   # (1, 4Hp)

    # --- hoisted input projection: pad x first, GEMM with M = Tp*Bpt (time-major),
    #     bias add + bf16 cast fused into the GEMM epilogue ---
    x_p = jnp.pad(jnp.asarray(x, f32), ((0, Bpt - B), (0, Tp - T), (0, 0)))
    x_tm = jnp.transpose(x_p, (1, 0, 2)).reshape(Tp * Bpt, D)            # (Tp*Bpt, D)
    pre = (jnp.dot(x_tm.astype(bf16), wih_t.astype(bf16),
                   preferred_element_type=f32) + bias).astype(bf16)      # (Tp*Bpt, 4Hp)
    pre = pre.reshape(Tp, Bpt, 4 * Hp)                                   # time-major

    # padded batch rows get length 0 -> stay zero through the recurrence
    lens = jnp.pad(jnp.asarray(lengths, jnp.int32), (0, Bpt - B))
    lens2d = lens.reshape(Bpt, 1)
    block_max_len = jnp.max(lens.reshape(n_bb, Bb), axis=1)              # (n_bb,) int32

    kernel = functools.partial(_lstm_chunk_kernel, hidden_pad=Hp,
                               time_chunk=Tc, unrolled=(Hp <= 256))

    out_pad, hn_pad, cn_pad = pl.pallas_call(
        kernel,
        out_shape=(
            jax.ShapeDtypeStruct((Tp, Bpt, Hp), out_dtype),
            jax.ShapeDtypeStruct((Bpt, Hp), f32),
            jax.ShapeDtypeStruct((Bpt, Hp), f32),
        ),
        grid_spec=pltpu.PrefetchScalarGridSpec(
            num_scalar_prefetch=1,
            grid=(n_bb, n_chunks),
            in_specs=[
                pl.BlockSpec((Tc, Bb, 4 * Hp), lambda b, t, ml: (t, b, 0)),  # pre chunk
                pl.BlockSpec((Hp, 4 * Hp), lambda b, t, ml: (0, 0)),         # W_hh^T
                pl.BlockSpec((Bb, 1), lambda b, t, ml: (b, 0)),              # lengths
            ],
            out_specs=[
                pl.BlockSpec((Tc, Bb, Hp), lambda b, t, ml: (t, b, 0)),      # lstm_out
                pl.BlockSpec((Bb, Hp), lambda b, t, ml: (b, 0)),             # hn
                pl.BlockSpec((Bb, Hp), lambda b, t, ml: (b, 0)),             # cn
            ],
            scratch_shapes=[
                pltpu.VMEM((Bb, Hp), f32),                                   # h carry
                pltpu.VMEM((Bb, Hp), f32),                                   # c carry
            ],
        ),
        compiler_params=pltpu.CompilerParams(
            dimension_semantics=("parallel", "arbitrary"),   # batch parallel, time serial
            vmem_limit_bytes=vmem_limit,
        ),
    )(block_max_len, pre, whh_t, lens2d)

    lstm_out = jnp.transpose(out_pad[:T, :B, :H], (1, 0, 2))   # back to batch-first
    hn = hn_pad[:B, :H][None, ...]
    cn = cn_pad[:B, :H][None, ...]
    return lstm_out, (hn, cn)


def _lstm_reference(x, lengths, w_ih, w_hh, b_ih, b_hh):
    """Pure-JAX reference (PyTorch packed-LSTM semantics) using the same
    precision policy as the kernel (bf16 matmul inputs, f32 accumulation/carries)."""
    B, T, D = x.shape
    H = w_hh.shape[1]
    f32, bf16 = jnp.float32, jnp.bfloat16
    wih_bf = jnp.asarray(w_ih, f32).T.astype(bf16)     # (D, 4H)
    whh_bf = jnp.asarray(w_hh, f32).T.astype(bf16)     # (H, 4H)
    bias = (jnp.asarray(b_ih, f32) + jnp.asarray(b_hh, f32))[None, :]

    pre = jnp.dot(jnp.asarray(x, f32).reshape(B * T, D).astype(bf16), wih_bf,
                  preferred_element_type=f32) + bias
    pre = pre.reshape(B, T, 4 * H).astype(bf16).astype(f32)   # mimic bf16 storage

    h = jnp.zeros((B, H), f32)
    c = jnp.zeros((B, H), f32)
    outs = []
    for t in range(T):
        gates = pre[:, t] + jnp.dot(h.astype(bf16), whh_bf,
                                    preferred_element_type=f32)
        i_g = jax.nn.sigmoid(gates[:, 0:H])
        f_g = jax.nn.sigmoid(gates[:, H:2 * H])
        g_g = jnp.tanh(gates[:, 2 * H:3 * H])
        o_g = jax.nn.sigmoid(gates[:, 3 * H:4 * H])
        c_new = f_g * c + i_g * g_g
        h_new = o_g * jnp.tanh(c_new)
        mask = (jnp.asarray(lengths) > t)[:, None]
        h = jnp.where(mask, h_new, h)
        c = jnp.where(mask, c_new, c)
        outs.append(jnp.where(mask, h_new, 0.0))
    return jnp.stack(outs, axis=1), h[None], c[None]


if __name__ == "__main__":
    # Small, deterministic example consistent with the module:
    # input_size=16, hidden_size=12, num_layers=1, batch=2, seq=8
    B, T, D, H = 2, 8, 16, 12

    key = jax.random.PRNGKey(0)
    kx, k1, k2, k3, k4 = jax.random.split(key, 5)

    x = jax.random.normal(kx, (B, T, D), dtype=jnp.float32)
    lengths = jnp.array([T, 5], dtype=jnp.int32)   # emulates PackedSequence lengths

    # PyTorch nn.LSTM init: U(-1/sqrt(H), 1/sqrt(H)), deterministic via PRNGKey(0)
    bound = 1.0 / (H ** 0.5)
    w_ih = jax.random.uniform(k1, (4 * H, D), jnp.float32, -bound, bound)
    w_hh = jax.random.uniform(k2, (4 * H, H), jnp.float32, -bound, bound)
    b_ih = jax.random.uniform(k3, (4 * H,), jnp.float32, -bound, bound)
    b_hh = jax.random.uniform(k4, (4 * H,), jnp.float32, -bound, bound)

    lstm_out, (hn, cn) = lstm_all_history(x, lengths, w_ih, w_hh, b_ih, b_hh)
    jax.block_until_ready((lstm_out, hn, cn))

    ref_out, ref_hn, ref_cn = _lstm_reference(x, lengths, w_ih, w_hh, b_ih, b_hh)
    assert lstm_out.shape == (B, T, H) and hn.shape == (1, B, H) and cn.shape == (1, B, H)
    # bf16 MXU path on both sides; tolerance covers accumulation-order /
    # tanh-vs-2*sigmoid(2x)-1 approximation differences.
    assert jnp.allclose(lstm_out, ref_out, rtol=2e-2, atol=2e-2)
    assert jnp.allclose(hn, ref_hn, rtol=2e-2, atol=2e-2)
    assert jnp.allclose(cn, ref_cn, rtol=2e-2, atol=2e-2)

    print("KERNEL_OK")
</pallas_src>

<mosaic_0001>
module attributes {stable_mosaic.version = 11 : i64} {
  func.func @_lstm_chunk_kernel(%arg0: i32, %arg1: i32, %arg2: memref<1xi32, #tpu.memory_space<smem>>, %arg3: memref<8x8x512xbf16, #tpu.memory_space<vmem>>, %arg4: memref<128x512xbf16, #tpu.memory_space<vmem>>, %arg5: memref<8x1xi32, #tpu.memory_space<vmem>>, %arg6: memref<8x8x128xf32, #tpu.memory_space<vmem>>, %arg7: memref<8x128xf32, #tpu.memory_space<vmem>>, %arg8: memref<8x128xf32, #tpu.memory_space<vmem>>, %arg9: memref<8x128xf32, #tpu.memory_space<vmem>>, %arg10: memref<8x128xf32, #tpu.memory_space<vmem>>) attributes {dimension_semantics = [#tpu.dimension_semantics<parallel>, #tpu.dimension_semantics<arbitrary>], iteration_bounds = array<i64: 1, 1>, scalar_prefetch = 1 : i64, scratch_operands = 2 : i64, tpu.core_type = #tpu.core_type<tc>, window_params = [{transform_indices = @transform_0, window_bounds = array<i64: 8, 8, 512>}, {pipeline_mode = #tpu.pipeline_mode<synchronous>, transform_indices = @transform_1, window_bounds = array<i64: 128, 512>}, {transform_indices = @transform_2, window_bounds = array<i64: 8, 1>}, {transform_indices = @transform_3, window_bounds = array<i64: 8, 8, 128>}, {transform_indices = @transform_4, window_bounds = array<i64: 8, 128>}, {transform_indices = @transform_5, window_bounds = array<i64: 8, 128>}]} {
    %c0_i32 = arith.constant 0 : i32
    %0 = arith.cmpi eq, %arg1, %c0_i32 : i32
    %1 = arith.extui %0 : i1 to i32
    %c0_i32_0 = arith.constant 0 : i32
    %2 = arith.cmpi ne, %1, %c0_i32_0 : i32
    scf.if %2 {
      %cst = arith.constant 0.000000e+00 : f32
      %15 = vector.broadcast %cst : f32 to vector<8x128xf32>
      %c0 = arith.constant 0 : index
      %c0_5 = arith.constant 0 : index
      %16 = vector.load %arg9[%c0, %c0_5] : memref<8x128xf32, #tpu.memory_space<vmem>>, vector<8x128xf32>
      tpu.vector_store %arg9[%c0, %c0_5], %15 {strides = array<i32>} : memref<8x128xf32, #tpu.memory_space<vmem>>, vector<8x128xf32>,
      %cst_6 = arith.constant 0.000000e+00 : f32
      %17 = vector.broadcast %cst_6 : f32 to vector<8x128xf32>
      %c0_7 = arith.constant 0 : index
      %c0_8 = arith.constant 0 : index
      %18 = vector.load %arg10[%c0_7, %c0_8] : memref<8x128xf32, #tpu.memory_space<vmem>>, vector<8x128xf32>
      tpu.vector_store %arg10[%c0_7, %c0_8], %17 {strides = array<i32>} : memref<8x128xf32, #tpu.memory_space<vmem>>, vector<8x128xf32>,
    } else {
    }
    %3 = arith.index_cast %arg0 : i32 to index
    %4 = memref.load %arg2[%3] : memref<1xi32, #tpu.memory_space<smem>>
    %c8_i32 = arith.constant 8 : i32
    %5 = arith.muli %arg1, %c8_i32 : i32
    %6 = arith.cmpi sge, %5, %4 : i32
    %7 = arith.extui %6 : i1 to i32
    %c0_i32_1 = arith.constant 0 : i32
    %8 = arith.cmpi ne, %7, %c0_i32_1 : i32
    scf.if %8 {
      %cst = arith.constant 0.000000e+00 : f32
      %15 = vector.broadcast %cst : f32 to vector<8x8x128xf32>
      %c0 = arith.constant 0 : index
      %c0_5 = arith.constant 0 : index
      %c0_6 = arith.constant 0 : index
      %16 = vector.load %arg6[%c0, %c0_5, %c0_6] : memref<8x8x128xf32, #tpu.memory_space<vmem>>, vector<8x8x128xf32>
      tpu.vector_store %arg6[%c0, %c0_5, %c0_6], %15 {strides = array<i32>} : memref<8x8x128xf32, #tpu.memory_space<vmem>>, vector<8x8x128xf32>,
    } else {
    }
    %9 = arith.cmpi slt, %5, %4 : i32
    %10 = arith.extui %9 : i1 to i32
    %c0_i32_2 = arith.constant 0 : i32
    %11 = arith.cmpi ne, %10, %c0_i32_2 : i32
    scf.if %11 {
      %c0 = arith.constant 0 : index
      %c0_5 = arith.constant 0 : index
      %15 = vector.load %arg5[%c0, %c0_5] : memref<8x1xi32, #tpu.memory_space<vmem>>, vector<8x1xi32>
      %c0_6 = arith.constant 0 : index
      %c0_7 = arith.constant 0 : index
      %16 = vector.load %arg9[%c0_6, %c0_7] : memref<8x128xf32, #tpu.memory_space<vmem>>, vector<8x128xf32>
      %c0_8 = arith.constant 0 : index
      %c0_9 = arith.constant 0 : index
      %17 = vector.load %arg10[%c0_8, %c0_9] : memref<8x128xf32, #tpu.memory_space<vmem>>, vector<8x128xf32>
      %c0_10 = arith.constant 0 : index
      %c0_11 = arith.constant 0 : index
      %c0_12 = arith.constant 0 : index
      %18 = vector.load %arg3[%c0_10, %c0_11, %c0_12] : memref<8x8x512xbf16, #tpu.memory_space<vmem>>, vector<1x8x512xbf16>
      %19 = vector.shape_cast %18 : vector<1x8x512xbf16> to vector<8x512xbf16>
      %20 = arith.extf %19 : vector<8x512xbf16> to vector<8x512xf32>
      %21 = arith.truncf %16 : vector<8x128xf32> to vector<8x128xbf16>
      %c0_13 = arith.constant 0 : index
      %c0_14 = arith.constant 0 : index
      %22 = vector.load %arg4[%c0_13, %c0_14] : memref<128x512xbf16, #tpu.memory_space<vmem>>, vector<128x512xbf16>
      %cst = arith.constant dense<0.000000e+00> : vector<8x512xf32>
      %23 = tpu.matmul %21, %22, %cst {dimension_numbers = #tpu.dot_dimension_numbers<[1], [0], [0], [1], [0, 0, 1, 1], [], []>} : vector<8x128xbf16>, vector<128x512xbf16>, vector<8x512xf32> -> vector<8x512xf32>
      %24 = arith.addf %20, %23 : vector<8x512xf32>
      %25 = arith.negf %24 : vector<8x512xf32>
      %26 = math.exp %25 : vector<8x512xf32>
      %cst_15 = arith.constant 1.000000e+00 : f32
      %27 = vector.broadcast %cst_15 : f32 to vector<8x512xf32>
      %28 = arith.addf %27, %26 : vector<8x512xf32>
      %29 = arith.divf %27, %28 : vector<8x512xf32>
      %30 = vector.extract_strided_slice %29 {offsets = [0, 0], sizes = [8, 128], strides = [1, 1]} : vector<8x512xf32> to vector<8x128xf32>
      %31 = vector.extract_strided_slice %29 {offsets = [0, 128], sizes = [8, 128], strides = [1, 1]} : vector<8x512xf32> to vector<8x128xf32>
      %32 = vector.extract_strided_slice %29 {offsets = [0, 256], sizes = [8, 128], strides = [1, 1]} : vector<8x512xf32> to vector<8x128xf32>
      %cst_16 = arith.constant 2.000000e+00 : f32
      %33 = vector.broadcast %cst_16 : f32 to vector<8x128xf32>
      %34 = arith.mulf %33, %32 : vector<8x128xf32>
      %cst_17 = arith.constant 1.000000e+00 : f32
      %35 = vector.broadcast %cst_17 : f32 to vector<8x128xf32>
      %36 = arith.subf %34, %35 : vector<8x128xf32>
      %37 = vector.extract_strided_slice %29 {offsets = [0, 384], sizes = [8, 128], strides = [1, 1]} : vector<8x512xf32> to vector<8x128xf32>
      %38 = arith.mulf %31, %17 : vector<8x128xf32>
      %39 = arith.mulf %30, %36 : vector<8x128xf32>
      %40 = arith.addf %38, %39 : vector<8x128xf32>
      %41 = math.tanh %40 : vector<8x128xf32>
      %42 = arith.mulf %37, %41 : vector<8x128xf32>
      %c0_i32_18 = arith.constant 0 : i32
      %43 = arith.addi %5, %c0_i32_18 : i32
      %44 = vector.broadcast %43 : i32 to vector<8x1xi32>
      %45 = arith.cmpi sgt, %15, %44 : vector<8x1xi32>
      %46 = vector.shape_cast %45 : vector<8x1xi1> to vector<8x1xi1>
      %47 = vector.broadcast %46 : vector<8x1xi1> to vector<8x128xi1>
      %48 = arith.select %47, %42, %16 : vector<8x128xi1>, vector<8x128xf32>
      %49 = vector.shape_cast %45 : vector<8x1xi1> to vector<8x1xi1>
      %50 = vector.broadcast %49 : vector<8x1xi1> to vector<8x128xi1>
      %51 = arith.select %50, %40, %17 : vector<8x128xi1>, vector<8x128xf32>
      %cst_19 = arith.constant 0.000000e+00 : f32
      %52 = vector.shape_cast %45 : vector<8x1xi1> to vector<8x1xi1>
      %53 = vector.broadcast %52 : vector<8x1xi1> to vector<8x128xi1>
      %54 = vector.broadcast %cst_19 : f32 to vector<8x128xf32>
      %55 = arith.select %53, %42, %54 : vector<8x128xi1>, vector<8x128xf32>
      %c0_20 = arith.constant 0 : index
      %c0_21 = arith.constant 0 : index
      %c0_22 = arith.constant 0 : index
      %56 = vector.load %arg6[%c0_20, %c0_21, %c0_22] : memref<8x8x128xf32, #tpu.memory_space<vmem>>, vector<1x8x128xf32>
      %57 = vector.shape_cast %56 : vector<1x8x128xf32> to vector<8x128xf32>
      %58 = vector.shape_cast %55 : vector<8x128xf32> to vector<1x8x128xf32>
      tpu.vector_store %arg6[%c0_20, %c0_21, %c0_22], %58 {strides = array<i32>} : memref<8x8x128xf32, #tpu.memory_space<vmem>>, vector<1x8x128xf32>,
      %c1 = arith.constant 1 : index
      %c0_23 = arith.constant 0 : index
      %c0_24 = arith.constant 0 : index
      %59 = vector.load %arg3[%c1, %c0_23, %c0_24] : memref<8x8x512xbf16, #tpu.memory_space<vmem>>, vector<1x8x512xbf16>
      %60 = vector.shape_cast %59 : vector<1x8x512xbf16> to vector<8x512xbf16>
      %61 = arith.extf %60 : vector<8x512xbf16> to vector<8x512xf32>
      %62 = arith.truncf %48 : vector<8x128xf32> to vector<8x128xbf16>
      %c0_25 = arith.constant 0 : index
      %c0_26 = arith.constant 0 : index
      %63 = vector.load %arg4[%c0_25, %c0_26] : memref<128x512xbf16, #tpu.memory_space<vmem>>, vector<128x512xbf16>
      %cst_27 = arith.constant dense<0.000000e+00> : vector<8x512xf32>
      %64 = tpu.matmul %62, %63, %cst_27 {dimension_numbers = #tpu.dot_dimension_numbers<[1], [0], [0], [1], [0, 0, 1, 1], [], []>} : vector<8x128xbf16>, vector<128x512xbf16>, vector<8x512xf32> -> vector<8x512xf32>
      %65 = arith.addf %61, %64 : vector<8x512xf32>
      %66 = arith.negf %65 : vector<8x512xf32>
      %67 = math.exp %66 : vector<8x512xf32>
      %cst_28 = arith.constant 1.000000e+00 : f32
      %68 = vector.broadcast %cst_28 : f32 to vector<8x512xf32>
      %69 = arith.addf %68, %67 : vector<8x512xf32>
      %70 = arith.divf %68, %69 : vector<8x512xf32>
      %71 = vector.extract_strided_slice %70 {offsets = [0, 0], sizes = [8, 128], strides = [1, 1]} : vector<8x512xf32> to vector<8x128xf32>
      %72 = vector.extract_strided_slice %70 {offsets = [0, 128], sizes = [8, 128], strides = [1, 1]} : vector<8x512xf32> to vector<8x128xf32>
      %73 = vector.extract_strided_slice %70 {offsets = [0, 256], sizes = [8, 128], strides = [1, 1]} : vector<8x512xf32> to vector<8x128xf32>
      %cst_29 = arith.constant 2.000000e+00 : f32
      %74 = vector.broadcast %cst_29 : f32 to vector<8x128xf32>
      %75 = arith.mulf %74, %73 : vector<8x128xf32>
      %cst_30 = arith.constant 1.000000e+00 : f32
      %76 = vector.broadcast %cst_30 : f32 to vector<8x128xf32>
      %77 = arith.subf %75, %76 : vector<8x128xf32>
      %78 = vector.extract_strided_slice %70 {offsets = [0, 384], sizes = [8, 128], strides = [1, 1]} : vector<8x512xf32> to vector<8x128xf32>
      %79 = arith.mulf %72, %51 : vector<8x128xf32>
      %80 = arith.mulf %71, %77 : vector<8x128xf32>
      %81 = arith.addf %79, %80 : vector<8x128xf32>
      %82 = math.tanh %81 : vector<8x128xf32>
      %83 = arith.mulf %78, %82 : vector<8x128xf32>
      %c1_i32 = arith.constant 1 : i32
      %84 = arith.addi %5, %c1_i32 : i32
      %85 = vector.broadcast %84 : i32 to vector<8x1xi32>
      %86 = arith.cmpi sgt, %15, %85 : vector<8x1xi32>
      %87 = vector.shape_cast %86 : vector<8x1xi1> to vector<8x1xi1>
      %88 = vector.broadcast %87 : vector<8x1xi1> to vector<8x128xi1>
      %89 = arith.select %88, %83, %48 : vector<8x128xi1>, vector<8x128xf32>
      %90 = vector.shape_cast %86 : vector<8x1xi1> to vector<8x1xi1>
      %91 = vector.broadcast %90 : vector<8x1xi1> to vector<8x128xi1>
      %92 = arith.select %91, %81, %51 : vector<8x128xi1>, vector<8x128xf32>
      %cst_31 = arith.constant 0.000000e+00 : f32
      %93 = vector.shape_cast %86 : vector<8x1xi1> to vector<8x1xi1>
      %94 = vector.broadcast %93 : vector<8x1xi1> to vector<8x128xi1>
      %95 = vector.broadcast %cst_31 : f32 to vector<8x128xf32>
      %96 = arith.select %94, %83, %95 : vector<8x128xi1>, vector<8x128xf32>
      %c1_32 = arith.constant 1 : index
      %c0_33 = arith.constant 0 : index
      %c0_34 = arith.constant 0 : index
      %97 = vector.load %arg6[%c1_32, %c0_33, %c0_34] : memref<8x8x128xf32, #tpu.memory_space<vmem>>, vector<1x8x128xf32>
      %98 = vector.shape_cast %97 : vector<1x8x128xf32> to vector<8x128xf32>
      %99 = vector.shape_cast %96 : vector<8x128xf32> to vector<1x8x128xf32>
      tpu.vector_store %arg6[%c1_32, %c0_33, %c0_34], %99 {strides = array<i32>} : memref<8x8x128xf32, #tpu.memory_space<vmem>>, vector<1x8x128xf32>,
      %c2 = arith.constant 2 : index
      %c0_35 = arith.constant 0 : index
      %c0_36 = arith.constant 0 : index
      %100 = vector.load %arg3[%c2, %c0_35, %c0_36] : memref<8x8x512xbf16, #tpu.memory_space<vmem>>, vector<1x8x512xbf16>
      %101 = vector.shape_cast %100 : vector<1x8x512xbf16> to vector<8x512xbf16>
      %102 = arith.extf %101 : vector<8x512xbf16> to vector<8x512xf32>
      %103 = arith.truncf %89 : vector<8x128xf32> to vector<8x128xbf16>
      %c0_37 = arith.constant 0 : index
      %c0_38 = arith.constant 0 : index
      %104 = vector.load %arg4[%c0_37, %c0_38] : memref<128x512xbf16, #tpu.memory_space<vmem>>, vector<128x512xbf16>
      %cst_39 = arith.constant dense<0.000000e+00> : vector<8x512xf32>
      %105 = tpu.matmul %103, %104, %cst_39 {dimension_numbers = #tpu.dot_dimension_numbers<[1], [0], [0], [1], [0, 0, 1, 1], [], []>} : vector<8x128xbf16>, vector<128x512xbf16>, vector<8x512xf32> -> vector<8x512xf32>
      %106 = arith.addf %102, %105 : vector<8x512xf32>
      %107 = arith.negf %106 : vector<8x512xf32>
      %108 = math.exp %107 : vector<8x512xf32>
      %cst_40 = arith.constant 1.000000e+00 : f32
      %109 = vector.broadcast %cst_40 : f32 to vector<8x512xf32>
      %110 = arith.addf %109, %108 : vector<8x512xf32>
      %111 = arith.divf %109, %110 : vector<8x512xf32>
      %112 = vector.extract_strided_slice %111 {offsets = [0, 0], sizes = [8, 128], strides = [1, 1]} : vector<8x512xf32> to vector<8x128xf32>
      %113 = vector.extract_strided_slice %111 {offsets = [0, 128], sizes = [8, 128], strides = [1, 1]} : vector<8x512xf32> to vector<8x128xf32>
      %114 = vector.extract_strided_slice %111 {offsets = [0, 256], sizes = [8, 128], strides = [1, 1]} : vector<8x512xf32> to vector<8x128xf32>
      %cst_41 = arith.constant 2.000000e+00 : f32
      %115 = vector.broadcast %cst_41 : f32 to vector<8x128xf32>
      %116 = arith.mulf %115, %114 : vector<8x128xf32>
      %cst_42 = arith.constant 1.000000e+00 : f32
      %117 = vector.broadcast %cst_42 : f32 to vector<8x128xf32>
      %118 = arith.subf %116, %117 : vector<8x128xf32>
      %119 = vector.extract_strided_slice %111 {offsets = [0, 384], sizes = [8, 128], strides = [1, 1]} : vector<8x512xf32> to vector<8x128xf32>
      %120 = arith.mulf %113, %92 : vector<8x128xf32>
      %121 = arith.mulf %112, %118 : vector<8x128xf32>
      %122 = arith.addf %120, %121 : vector<8x128xf32>
      %123 = math.tanh %122 : vector<8x128xf32>
      %124 = arith.mulf %119, %123 : vector<8x128xf32>
      %c2_i32 = arith.constant 2 : i32
      %125 = arith.addi %5, %c2_i32 : i32
      %126 = vector.broadcast %125 : i32 to vector<8x1xi32>
      %127 = arith.cmpi sgt, %15, %126 : vector<8x1xi32>
      %128 = vector.shape_cast %127 : vector<8x1xi1> to vector<8x1xi1>
      %129 = vector.broadcast %128 : vector<8x1xi1> to vector<8x128xi1>
      %130 = arith.select %129, %124, %89 : vector<8x128xi1>, vector<8x128xf32>
      %131 = vector.shape_cast %127 : vector<8x1xi1> to vector<8x1xi1>
      %132 = vector.broadcast %131 : vector<8x1xi1> to vector<8x128xi1>
      %133 = arith.select %132, %122, %92 : vector<8x128xi1>, vector<8x128xf32>
      %cst_43 = arith.constant 0.000000e+00 : f32
      %134 = vector.shape_cast %127 : vector<8x1xi1> to vector<8x1xi1>
      %135 = vector.broadcast %134 : vector<8x1xi1> to vector<8x128xi1>
      %136 = vector.broadcast %cst_43 : f32 to vector<8x128xf32>
      %137 = arith.select %135, %124, %136 : vector<8x128xi1>, vector<8x128xf32>
      %c2_44 = arith.constant 2 : index
      %c0_45 = arith.constant 0 : index
      %c0_46 = arith.constant 0 : index
      %138 = vector.load %arg6[%c2_44, %c0_45, %c0_46] : memref<8x8x128xf32, #tpu.memory_space<vmem>>, vector<1x8x128xf32>
      %139 = vector.shape_cast %138 : vector<1x8x128xf32> to vector<8x128xf32>
      %140 = vector.shape_cast %137 : vector<8x128xf32> to vector<1x8x128xf32>
      tpu.vector_store %arg6[%c2_44, %c0_45, %c0_46], %140 {strides = array<i32>} : memref<8x8x128xf32, #tpu.memory_space<vmem>>, vector<1x8x128xf32>,
      %c3 = arith.constant 3 : index
      %c0_47 = arith.constant 0 : index
      %c0_48 = arith.constant 0 : index
      %141 = vector.load %arg3[%c3, %c0_47, %c0_48] : memref<8x8x512xbf16, #tpu.memory_space<vmem>>, vector<1x8x512xbf16>
      %142 = vector.shape_cast %141 : vector<1x8x512xbf16> to vector<8x512xbf16>
      %143 = arith.extf %142 : vector<8x512xbf16> to vector<8x512xf32>
      %144 = arith.truncf %130 : vector<8x128xf32> to vector<8x128xbf16>
      %c0_49 = arith.constant 0 : index
      %c0_50 = arith.constant 0 : index
      %145 = vector.load %arg4[%c0_49, %c0_50] : memref<128x512xbf16, #tpu.memory_space<vmem>>, vector<128x512xbf16>
      %cst_51 = arith.constant dense<0.000000e+00> : vector<8x512xf32>
      %146 = tpu.matmul %144, %145, %cst_51 {dimension_numbers = #tpu.dot_dimension_numbers<[1], [0], [0], [1], [0, 0, 1, 1], [], []>} : vector<8x128xbf16>, vector<128x512xbf16>, vector<8x512xf32> -> vector<8x512xf32>
      %147 = arith.addf %143, %146 : vector<8x512xf32>
      %148 = arith.negf %147 : vector<8x512xf32>
      %149 = math.exp %148 : vector<8x512xf32>
      %cst_52 = arith.constant 1.000000e+00 : f32
      %150 = vector.broadcast %cst_52 : f32 to vector<8x512xf32>
      %151 = arith.addf %150, %149 : vector<8x512xf32>
      %152 = arith.divf %150, %151 : vector<8x512xf32>
      %153 = vector.extract_strided_slice %152 {offsets = [0, 0], sizes = [8, 128], strides = [1, 1]} : vector<8x512xf32> to vector<8x128xf32>
      %154 = vector.extract_strided_slice %152 {offsets = [0, 128], sizes = [8, 128], strides = [1, 1]} : vector<8x512xf32> to vector<8x128xf32>
      %155 = vector.extract_strided_slice %152 {offsets = [0, 256], sizes = [8, 128], strides = [1, 1]} : vector<8x512xf32> to vector<8x128xf32>
      %cst_53 = arith.constant 2.000000e+00 : f32
      %156 = vector.broadcast %cst_53 : f32 to vector<8x128xf32>
      %157 = arith.mulf %156, %155 : vector<8x128xf32>
      %cst_54 = arith.constant 1.000000e+00 : f32
      %158 = vector.broadcast %cst_54 : f32 to vector<8x128xf32>
      %159 = arith.subf %157, %158 : vector<8x128xf32>
      %160 = vector.extract_strided_slice %152 {offsets = [0, 384], sizes = [8, 128], strides = [1, 1]} : vector<8x512xf32> to vector<8x128xf32>
      %161 = arith.mulf %154, %133 : vector<8x128xf32>
      %162 = arith.mulf %153, %159 : vector<8x128xf32>
      %163 = arith.addf %161, %162 : vector<8x128xf32>
      %164 = math.tanh %163 : vector<8x128xf32>
      %165 = arith.mulf %160, %164 : vector<8x128xf32>
      %c3_i32 = arith.constant 3 : i32
      %166 = arith.addi %5, %c3_i32 : i32
      %167 = vector.broadcast %166 : i32 to vector<8x1xi32>
      %168 = arith.cmpi sgt, %15, %167 : vector<8x1xi32>
      %169 = vector.shape_cast %168 : vector<8x1xi1> to vector<8x1xi1>
      %170 = vector.broadcast %169 : vector<8x1xi1> to vector<8x128xi1>
      %171 = arith.select %170, %165, %130 : vector<8x128xi1>, vector<8x128xf32>
      %172 = vector.shape_cast %168 : vector<8x1xi1> to vector<8x1xi1>
      %173 = vector.broadcast %172 : vector<8x1xi1> to vector<8x128xi1>
      %174 = arith.select %173, %163, %133 : vector<8x128xi1>, vector<8x128xf32>
      %cst_55 = arith.constant 0.000000e+00 : f32
      %175 = vector.shape_cast %168 : vector<8x1xi1> to vector<8x1xi1>
      %176 = vector.broadcast %175 : vector<8x1xi1> to vector<8x128xi1>
      %177 = vector.broadcast %cst_55 : f32 to vector<8x128xf32>
      %178 = arith.select %176, %165, %177 : vector<8x128xi1>, vector<8x128xf32>
      %c3_56 = arith.constant 3 : index
      %c0_57 = arith.constant 0 : index
      %c0_58 = arith.constant 0 : index
      %179 = vector.load %arg6[%c3_56, %c0_57, %c0_58] : memref<8x8x128xf32, #tpu.memory_space<vmem>>, vector<1x8x128xf32>
      %180 = vector.shape_cast %179 : vector<1x8x128xf32> to vector<8x128xf32>
      %181 = vector.shape_cast %178 : vector<8x128xf32> to vector<1x8x128xf32>
      tpu.vector_store %arg6[%c3_56, %c0_57, %c0_58], %181 {strides = array<i32>} : memref<8x8x128xf32, #tpu.memory_space<vmem>>, vector<1x8x128xf32>,
      %c4 = arith.constant 4 : index
      %c0_59 = arith.constant 0 : index
      %c0_60 = arith.constant 0 : index
      %182 = vector.load %arg3[%c4, %c0_59, %c0_60] : memref<8x8x512xbf16, #tpu.memory_space<vmem>>, vector<1x8x512xbf16>
      %183 = vector.shape_cast %182 : vector<1x8x512xbf16> to vector<8x512xbf16>
      %184 = arith.extf %183 : vector<8x512xbf16> to vector<8x512xf32>
      %185 = arith.truncf %171 : vector<8x128xf32> to vector<8x128xbf16>
      %c0_61 = arith.constant 0 : index
      %c0_62 = arith.constant 0 : index
      %186 = vector.load %arg4[%c0_61, %c0_62] : memref<128x512xbf16, #tpu.memory_space<vmem>>, vector<128x512xbf16>
      %cst_63 = arith.constant dense<0.000000e+00> : vector<8x512xf32>
      %187 = tpu.matmul %185, %186, %cst_63 {dimension_numbers = #tpu.dot_dimension_numbers<[1], [0], [0], [1], [0, 0, 1, 1], [], []>} : vector<8x128xbf16>, vector<128x512xbf16>, vector<8x512xf32> -> vector<8x512xf32>
      %188 = arith.addf %184, %187 : vector<8x512xf32>
      %189 = arith.negf %188 : vector<8x512xf32>
      %190 = math.exp %189 : vector<8x512xf32>
      %cst_64 = arith.constant 1.000000e+00 : f32
      %191 = vector.broadcast %cst_64 : f32 to vector<8x512xf32>
      %192 = arith.addf %191, %190 : vector<8x512xf32>
      %193 = arith.divf %191, %192 : vector<8x512xf32>
      %194 = vector.extract_strided_slice %193 {offsets = [0, 0], sizes = [8, 128], strides = [1, 1]} : vector<8x512xf32> to vector<8x128xf32>
      %195 = vector.extract_strided_slice %193 {offsets = [0, 128], sizes = [8, 128], strides = [1, 1]} : vector<8x512xf32> to vector<8x128xf32>
      %196 = vector.extract_strided_slice %193 {offsets = [0, 256], sizes = [8, 128], strides = [1, 1]} : vector<8x512xf32> to vector<8x128xf32>
      %cst_65 = arith.constant 2.000000e+00 : f32
      %197 = vector.broadcast %cst_65 : f32 to vector<8x128xf32>
      %198 = arith.mulf %197, %196 : vector<8x128xf32>
      %cst_66 = arith.constant 1.000000e+00 : f32
      %199 = vector.broadcast %cst_66 : f32 to vector<8x128xf32>
      %200 = arith.subf %198, %199 : vector<8x128xf32>
      %201 = vector.extract_strided_slice %193 {offsets = [0, 384], sizes = [8, 128], strides = [1, 1]} : vector<8x512xf32> to vector<8x128xf32>
      %202 = arith.mulf %195, %174 : vector<8x128xf32>
      %203 = arith.mulf %194, %200 : vector<8x128xf32>
      %204 = arith.addf %202, %203 : vector<8x128xf32>
      %205 = math.tanh %204 : vector<8x128xf32>
      %206 = arith.mulf %201, %205 : vector<8x128xf32>
      %c4_i32 = arith.constant 4 : i32
      %207 = arith.addi %5, %c4_i32 : i32
      %208 = vector.broadcast %207 : i32 to vector<8x1xi32>
      %209 = arith.cmpi sgt, %15, %208 : vector<8x1xi32>
      %210 = vector.shape_cast %209 : vector<8x1xi1> to vector<8x1xi1>
      %211 = vector.broadcast %210 : vector<8x1xi1> to vector<8x128xi1>
      %212 = arith.select %211, %206, %171 : vector<8x128xi1>, vector<8x128xf32>
      %213 = vector.shape_cast %209 : vector<8x1xi1> to vector<8x1xi1>
      %214 = vector.broadcast %213 : vector<8x1xi1> to vector<8x128xi1>
      %215 = arith.select %214, %204, %174 : vector<8x128xi1>, vector<8x128xf32>
      %cst_67 = arith.constant 0.000000e+00 : f32
      %216 = vector.shape_cast %209 : vector<8x1xi1> to vector<8x1xi1>
      %217 = vector.broadcast %216 : vector<8x1xi1> to vector<8x128xi1>
      %218 = vector.broadcast %cst_67 : f32 to vector<8x128xf32>
      %219 = arith.select %217, %206, %218 : vector<8x128xi1>, vector<8x128xf32>
      %c4_68 = arith.constant 4 : index
      %c0_69 = arith.constant 0 : index
      %c0_70 = arith.constant 0 : index
      %220 = vector.load %arg6[%c4_68, %c0_69, %c0_70] : memref<8x8x128xf32, #tpu.memory_space<vmem>>, vector<1x8x128xf32>
      %221 = vector.shape_cast %220 : vector<1x8x128xf32> to vector<8x128xf32>
      %222 = vector.shape_cast %219 : vector<8x128xf32> to vector<1x8x128xf32>
      tpu.vector_store %arg6[%c4_68, %c0_69, %c0_70], %222 {strides = array<i32>} : memref<8x8x128xf32, #tpu.memory_space<vmem>>, vector<1x8x128xf32>,
      %c5 = arith.constant 5 : index
      %c0_71 = arith.constant 0 : index
      %c0_72 = arith.constant 0 : index
      %223 = vector.load %arg3[%c5, %c0_71, %c0_72] : memref<8x8x512xbf16, #tpu.memory_space<vmem>>, vector<1x8x512xbf16>
      %224 = vector.shape_cast %223 : vector<1x8x512xbf16> to vector<8x512xbf16>
      %225 = arith.extf %224 : vector<8x512xbf16> to vector<8x512xf32>
      %226 = arith.truncf %212 : vector<8x128xf32> to vector<8x128xbf16>
      %c0_73 = arith.constant 0 : index
      %c0_74 = arith.constant 0 : index
      %227 = vector.load %arg4[%c0_73, %c0_74] : memref<128x512xbf16, #tpu.memory_space<vmem>>, vector<128x512xbf16>
      %cst_75 = arith.constant dense<0.000000e+00> : vector<8x512xf32>
      %228 = tpu.matmul %226, %227, %cst_75 {dimension_numbers = #tpu.dot_dimension_numbers<[1], [0], [0], [1], [0, 0, 1, 1], [], []>} : vector<8x128xbf16>, vector<128x512xbf16>, vector<8x512xf32> -> vector<8x512xf32>
      %229 = arith.addf %225, %228 : vector<8x512xf32>
      %230 = arith.negf %229 : vector<8x512xf32>
      %231 = math.exp %230 : vector<8x512xf32>
      %cst_76 = arith.constant 1.000000e+00 : f32
      %232 = vector.broadcast %cst_76 : f32 to vector<8x512xf32>
      %233 = arith.addf %232, %231 : vector<8x512xf32>
      %234 = arith.divf %232, %233 : vector<8x512xf32>
      %235 = vector.extract_strided_slice %234 {offsets = [0, 0], sizes = [8, 128], strides = [1, 1]} : vector<8x512xf32> to vector<8x128xf32>
      %236 = vector.extract_strided_slice %234 {offsets = [0, 128], sizes = [8, 128], strides = [1, 1]} : vector<8x512xf32> to vector<8x128xf32>
      %237 = vector.extract_strided_slice %234 {offsets = [0, 256], sizes = [8, 128], strides = [1, 1]} : vector<8x512xf32> to vector<8x128xf32>
      %cst_77 = arith.constant 2.000000e+00 : f32
      %238 = vector.broadcast %cst_77 : f32 to vector<8x128xf32>
      %239 = arith.mulf %238, %237 : vector<8x128xf32>
      %cst_78 = arith.constant 1.000000e+00 : f32
      %240 = vector.broadcast %cst_78 : f32 to vector<8x128xf32>
      %241 = arith.subf %239, %240 : vector<8x128xf32>
      %242 = vector.extract_strided_slice %234 {offsets = [0, 384], sizes = [8, 128], strides = [1, 1]} : vector<8x512xf32> to vector<8x128xf32>
      %243 = arith.mulf %236, %215 : vector<8x128xf32>
      %244 = arith.mulf %235, %241 : vector<8x128xf32>
      %245 = arith.addf %243, %244 : vector<8x128xf32>
      %246 = math.tanh %245 : vector<8x128xf32>
      %247 = arith.mulf %242, %246 : vector<8x128xf32>
      %c5_i32 = arith.constant 5 : i32
      %248 = arith.addi %5, %c5_i32 : i32
      %249 = vector.broadcast %248 : i32 to vector<8x1xi32>
      %250 = arith.cmpi sgt, %15, %249 : vector<8x1xi32>
      %251 = vector.shape_cast %250 : vector<8x1xi1> to vector<8x1xi1>
      %252 = vector.broadcast %251 : vector<8x1xi1> to vector<8x128xi1>
      %253 = arith.select %252, %247, %212 : vector<8x128xi1>, vector<8x128xf32>
      %254 = vector.shape_cast %250 : vector<8x1xi1> to vector<8x1xi1>
      %255 = vector.broadcast %254 : vector<8x1xi1> to vector<8x128xi1>
      %256 = arith.select %255, %245, %215 : vector<8x128xi1>, vector<8x128xf32>
      %cst_79 = arith.constant 0.000000e+00 : f32
      %257 = vector.shape_cast %250 : vector<8x1xi1> to vector<8x1xi1>
      %258 = vector.broadcast %257 : vector<8x1xi1> to vector<8x128xi1>
      %259 = vector.broadcast %cst_79 : f32 to vector<8x128xf32>
      %260 = arith.select %258, %247, %259 : vector<8x128xi1>, vector<8x128xf32>
      %c5_80 = arith.constant 5 : index
      %c0_81 = arith.constant 0 : index
      %c0_82 = arith.constant 0 : index
      %261 = vector.load %arg6[%c5_80, %c0_81, %c0_82] : memref<8x8x128xf32, #tpu.memory_space<vmem>>, vector<1x8x128xf32>
      %262 = vector.shape_cast %261 : vector<1x8x128xf32> to vector<8x128xf32>
      %263 = vector.shape_cast %260 : vector<8x128xf32> to vector<1x8x128xf32>
      tpu.vector_store %arg6[%c5_80, %c0_81, %c0_82], %263 {strides = array<i32>} : memref<8x8x128xf32, #tpu.memory_space<vmem>>, vector<1x8x128xf32>,
      %c6 = arith.constant 6 : index
      %c0_83 = arith.constant 0 : index
      %c0_84 = arith.constant 0 : index
      %264 = vector.load %arg3[%c6, %c0_83, %c0_84] : memref<8x8x512xbf16, #tpu.memory_space<vmem>>, vector<1x8x512xbf16>
      %265 = vector.shape_cast %264 : vector<1x8x512xbf16> to vector<8x512xbf16>
      %266 = arith.extf %265 : vector<8x512xbf16> to vector<8x512xf32>
      %267 = arith.truncf %253 : vector<8x128xf32> to vector<8x128xbf16>
      %c0_85 = arith.constant 0 : index
      %c0_86 = arith.constant 0 : index
      %268 = vector.load %arg4[%c0_85, %c0_86] : memref<128x512xbf16, #tpu.memory_space<vmem>>, vector<128x512xbf16>
      %cst_87 = arith.constant dense<0.000000e+00> : vector<8x512xf32>
      %269 = tpu.matmul %267, %268, %cst_87 {dimension_numbers = #tpu.dot_dimension_numbers<[1], [0], [0], [1], [0, 0, 1, 1], [], []>} : vector<8x128xbf16>, vector<128x512xbf16>, vector<8x512xf32> -> vector<8x512xf32>
      %270 = arith.addf %266, %269 : vector<8x512xf32>
      %271 = arith.negf %270 : vector<8x512xf32>
      %272 = math.exp %271 : vector<8x512xf32>
      %cst_88 = arith.constant 1.000000e+00 : f32
      %273 = vector.broadcast %cst_88 : f32 to vector<8x512xf32>
      %274 = arith.addf %273, %272 : vector<8x512xf32>
      %275 = arith.divf %273, %274 : vector<8x512xf32>
      %276 = vector.extract_strided_slice %275 {offsets = [0, 0], sizes = [8, 128], strides = [1, 1]} : vector<8x512xf32> to vector<8x128xf32>
      %277 = vector.extract_strided_slice %275 {offsets = [0, 128], sizes = [8, 128], strides = [1, 1]} : vector<8x512xf32> to vector<8x128xf32>
      %278 = vector.extract_strided_slice %275 {offsets = [0, 256], sizes = [8, 128], strides = [1, 1]} : vector<8x512xf32> to vector<8x128xf32>
      %cst_89 = arith.constant 2.000000e+00 : f32
      %279 = vector.broadcast %cst_89 : f32 to vector<8x128xf32>
      %280 = arith.mulf %279, %278 : vector<8x128xf32>
      %cst_90 = arith.constant 1.000000e+00 : f32
      %281 = vector.broadcast %cst_90 : f32 to vector<8x128xf32>
      %282 = arith.subf %280, %281 : vector<8x128xf32>
      %283 = vector.extract_strided_slice %275 {offsets = [0, 384], sizes = [8, 128], strides = [1, 1]} : vector<8x512xf32> to vector<8x128xf32>
      %284 = arith.mulf %277, %256 : vector<8x128xf32>
      %285 = arith.mulf %276, %282 : vector<8x128xf32>
      %286 = arith.addf %284, %285 : vector<8x128xf32>
      %287 = math.tanh %286 : vector<8x128xf32>
      %288 = arith.mulf %283, %287 : vector<8x128xf32>
      %c6_i32 = arith.constant 6 : i32
      %289 = arith.addi %5, %c6_i32 : i32
      %290 = vector.broadcast %289 : i32 to vector<8x1xi32>
      %291 = arith.cmpi sgt, %15, %290 : vector<8x1xi32>
      %292 = vector.shape_cast %291 : vector<8x1xi1> to vector<8x1xi1>
      %293 = vector.broadcast %292 : vector<8x1xi1> to vector<8x128xi1>
      %294 = arith.select %293, %288, %253 : vector<8x128xi1>, vector<8x128xf32>
      %295 = vector.shape_cast %291 : vector<8x1xi1> to vector<8x1xi1>
      %296 = vector.broadcast %295 : vector<8x1xi1> to vector<8x128xi1>
      %297 = arith.select %296, %286, %256 : vector<8x128xi1>, vector<8x128xf32>
      %cst_91 = arith.constant 0.000000e+00 : f32
      %298 = vector.shape_cast %291 : vector<8x1xi1> to vector<8x1xi1>
      %299 = vector.broadcast %298 : vector<8x1xi1> to vector<8x128xi1>
      %300 = vector.broadcast %cst_91 : f32 to vector<8x128xf32>
      %301 = arith.select %299, %288, %300 : vector<8x128xi1>, vector<8x128xf32>
      %c6_92 = arith.constant 6 : index
      %c0_93 = arith.constant 0 : index
      %c0_94 = arith.constant 0 : index
      %302 = vector.load %arg6[%c6_92, %c0_93, %c0_94] : memref<8x8x128xf32, #tpu.memory_space<vmem>>, vector<1x8x128xf32>
      %303 = vector.shape_cast %302 : vector<1x8x128xf32> to vector<8x128xf32>
      %304 = vector.shape_cast %301 : vector<8x128xf32> to vector<1x8x128xf32>
      tpu.vector_store %arg6[%c6_92, %c0_93, %c0_94], %304 {strides = array<i32>} : memref<8x8x128xf32, #tpu.memory_space<vmem>>, vector<1x8x128xf32>,
      %c7 = arith.constant 7 : index
      %c0_95 = arith.constant 0 : index
      %c0_96 = arith.constant 0 : index
      %305 = vector.load %arg3[%c7, %c0_95, %c0_96] : memref<8x8x512xbf16, #tpu.memory_space<vmem>>, vector<1x8x512xbf16>
      %306 = vector.shape_cast %305 : vector<1x8x512xbf16> to vector<8x512xbf16>
      %307 = arith.extf %306 : vector<8x512xbf16> to vector<8x512xf32>
      %308 = arith.truncf %294 : vector<8x128xf32> to vector<8x128xbf16>
      %c0_97 = arith.constant 0 : index
      %c0_98 = arith.constant 0 : index
      %309 = vector.load %arg4[%c0_97, %c0_98] : memref<128x512xbf16, #tpu.memory_space<vmem>>, vector<128x512xbf16>
      %cst_99 = arith.constant dense<0.000000e+00> : vector<8x512xf32>
      %310 = tpu.matmul %308, %309, %cst_99 {dimension_numbers = #tpu.dot_dimension_numbers<[1], [0], [0], [1], [0, 0, 1, 1], [], []>} : vector<8x128xbf16>, vector<128x512xbf16>, vector<8x512xf32> -> vector<8x512xf32>
      %311 = arith.addf %307, %310 : vector<8x512xf32>
      %312 = arith.negf %311 : vector<8x512xf32>
      %313 = math.exp %312 : vector<8x512xf32>
      %cst_100 = arith.constant 1.000000e+00 : f32
      %314 = vector.broadcast %cst_100 : f32 to vector<8x512xf32>
      %315 = arith.addf %314, %313 : vector<8x512xf32>
      %316 = arith.divf %314, %315 : vector<8x512xf32>
      %317 = vector.extract_strided_slice %316 {offsets = [0, 0], sizes = [8, 128], strides = [1, 1]} : vector<8x512xf32> to vector<8x128xf32>
      %318 = vector.extract_strided_slice %316 {offsets = [0, 128], sizes = [8, 128], strides = [1, 1]} : vector<8x512xf32> to vector<8x128xf32>
      %319 = vector.extract_strided_slice %316 {offsets = [0, 256], sizes = [8, 128], strides = [1, 1]} : vector<8x512xf32> to vector<8x128xf32>
      %cst_101 = arith.constant 2.000000e+00 : f32
      %320 = vector.broadcast %cst_101 : f32 to vector<8x128xf32>
      %321 = arith.mulf %320, %319 : vector<8x128xf32>
      %cst_102 = arith.constant 1.000000e+00 : f32
      %322 = vector.broadcast %cst_102 : f32 to vector<8x128xf32>
      %323 = arith.subf %321, %322 : vector<8x128xf32>
      %324 = vector.extract_strided_slice %316 {offsets = [0, 384], sizes = [8, 128], strides = [1, 1]} : vector<8x512xf32> to vector<8x128xf32>
      %325 = arith.mulf %318, %297 : vector<8x128xf32>
      %326 = arith.mulf %317, %323 : vector<8x128xf32>
      %327 = arith.addf %325, %326 : vector<8x128xf32>
      %328 = math.tanh %327 : vector<8x128xf32>
      %329 = arith.mulf %324, %328 : vector<8x128xf32>
      %c7_i32 = arith.constant 7 : i32
      %330 = arith.addi %5, %c7_i32 : i32
      %331 = vector.broadcast %330 : i32 to vector<8x1xi32>
      %332 = arith.cmpi sgt, %15, %331 : vector<8x1xi32>
      %333 = vector.shape_cast %332 : vector<8x1xi1> to vector<8x1xi1>
      %334 = vector.broadcast %333 : vector<8x1xi1> to vector<8x128xi1>
      %335 = arith.select %334, %329, %294 : vector<8x128xi1>, vector<8x128xf32>
      %336 = vector.shape_cast %332 : vector<8x1xi1> to vector<8x1xi1>
      %337 = vector.broadcast %336 : vector<8x1xi1> to vector<8x128xi1>
      %338 = arith.select %337, %327, %297 : vector<8x128xi1>, vector<8x128xf32>
      %cst_103 = arith.constant 0.000000e+00 : f32
      %339 = vector.shape_cast %332 : vector<8x1xi1> to vector<8x1xi1>
      %340 = vector.broadcast %339 : vector<8x1xi1> to vector<8x128xi1>
      %341 = vector.broadcast %cst_103 : f32 to vector<8x128xf32>
      %342 = arith.select %340, %329, %341 : vector<8x128xi1>, vector<8x128xf32>
      %c7_104 = arith.constant 7 : index
      %c0_105 = arith.constant 0 : index
      %c0_106 = arith.constant 0 : index
      %343 = vector.load %arg6[%c7_104, %c0_105, %c0_106] : memref<8x8x128xf32, #tpu.memory_space<vmem>>, vector<1x8x128xf32>
      %344 = vector.shape_cast %343 : vector<1x8x128xf32> to vector<8x128xf32>
      %345 = vector.shape_cast %342 : vector<8x128xf32> to vector<1x8x128xf32>
      tpu.vector_store %arg6[%c7_104, %c0_105, %c0_106], %345 {strides = array<i32>} : memref<8x8x128xf32, #tpu.memory_space<vmem>>, vector<1x8x128xf32>,
      %c0_107 = arith.constant 0 : index
      %c0_108 = arith.constant 0 : index
      %346 = vector.load %arg9[%c0_107, %c0_108] : memref<8x128xf32, #tpu.memory_space<vmem>>, vector<8x128xf32>
      tpu.vector_store %arg9[%c0_107, %c0_108], %335 {strides = array<i32>} : memref<8x128xf32, #tpu.memory_space<vmem>>, vector<8x128xf32>,
      %c0_109 = arith.constant 0 : index
      %c0_110 = arith.constant 0 : index
      %347 = vector.load %arg10[%c0_109, %c0_110] : memref<8x128xf32, #tpu.memory_space<vmem>>, vector<8x128xf32>
      tpu.vector_store %arg10[%c0_109, %c0_110], %338 {strides = array<i32>} : memref<8x128xf32, #tpu.memory_space<vmem>>, vector<8x128xf32>,
    } else {
    }
    %c0_i32_3 = arith.constant 0 : i32
    %12 = arith.cmpi eq, %arg1, %c0_i32_3 : i32
    %13 = arith.extui %12 : i1 to i32
    %c0_i32_4 = arith.constant 0 : i32
    %14 = arith.cmpi ne, %13, %c0_i32_4 : i32
    scf.if %14 {
      %c0 = arith.constant 0 : index
      %c0_5 = arith.constant 0 : index
      %15 = vector.load %arg9[%c0, %c0_5] : memref<8x128xf32, #tpu.memory_space<vmem>>, vector<8x128xf32>
      %c0_6 = arith.constant 0 : index
      %c0_7 = arith.constant 0 : index
      %16 = vector.load %arg7[%c0_6, %c0_7] : memref<8x128xf32, #tpu.memory_space<vmem>>, vector<8x128xf32>
      tpu.vector_store %arg7[%c0_6, %c0_7], %15 {strides = array<i32>} : memref<8x128xf32, #tpu.memory_space<vmem>>, vector<8x128xf32>,
      %c0_8 = arith.constant 0 : index
      %c0_9 = arith.constant 0 : index
      %17 = vector.load %arg10[%c0_8, %c0_9] : memref<8x128xf32, #tpu.memory_space<vmem>>, vector<8x128xf32>
      %c0_10 = arith.constant 0 : index
      %c0_11 = arith.constant 0 : index
      %18 = vector.load %arg8[%c0_10, %c0_11] : memref<8x128xf32, #tpu.memory_space<vmem>>, vector<8x128xf32>
      tpu.vector_store %arg8[%c0_10, %c0_11], %17 {strides = array<i32>} : memref<8x128xf32, #tpu.memory_space<vmem>>, vector<8x128xf32>,
    } else {
    }
    return
  }
  func.func @transform_0(%arg0: i32, %arg1: i32, %arg2: memref<1xi32, #tpu.memory_space<smem>>) -> (i32, i32, i32) {
    %c0_i32 = arith.constant 0 : i32
    %c0_i32_0 = arith.constant 0 : i32
    return %arg1, %arg0, %c0_i32 : i32, i32, i32
  }
  func.func @transform_1(%arg0: i32, %arg1: i32, %arg2: memref<1xi32, #tpu.memory_space<smem>>) -> (i32, i32) {
    %c0_i32 = arith.constant 0 : i32
    %c0_i32_0 = arith.constant 0 : i32
    %c0_i32_1 = arith.constant 0 : i32
    return %c0_i32, %c0_i32_0 : i32, i32
  }
  func.func @transform_2(%arg0: i32, %arg1: i32, %arg2: memref<1xi32, #tpu.memory_space<smem>>) -> (i32, i32) {
    %c0_i32 = arith.constant 0 : i32
    %c0_i32_0 = arith.constant 0 : i32
    return %arg0, %c0_i32 : i32, i32
  }
  func.func @transform_3(%arg0: i32, %arg1: i32, %arg2: memref<1xi32, #tpu.memory_space<smem>>) -> (i32, i32, i32) {
    %c0_i32 = arith.constant 0 : i32
    %c0_i32_0 = arith.constant 0 : i32
    return %arg1, %arg0, %c0_i32 : i32, i32, i32
  }
  func.func @transform_4(%arg0: i32, %arg1: i32, %arg2: memref<1xi32, #tpu.memory_space<smem>>) -> (i32, i32) {
    %c0_i32 = arith.constant 0 : i32
    %c0_i32_0 = arith.constant 0 : i32
    return %arg0, %c0_i32 : i32, i32
  }
  func.func @transform_5(%arg0: i32, %arg1: i32, %arg2: memref<1xi32, #tpu.memory_space<smem>>) -> (i32, i32) {
    %c0_i32 = arith.constant 0 : i32
    %c0_i32_0 = arith.constant 0 : i32
    return %arg0, %c0_i32 : i32, i32
  }
}

</mosaic_0001>

<bundles_post_ra>
// kernel: tpu_custom_call.1
= control target key start
LH: loop header
LB: loop body
LE: loop exit
PB: predicated region body
PF: predicated region fallthrough
CT: control target
= control target key end

     0   :  { %13 = vsyncpa [#allocation7], 0  ;;  %s3980_s0 = inlined_call_operand.<no memory space> [shape: s32[1], index: 0, kind: input, shape index: {}]   ;;  %s3981_s1 = inlined_call_operand.hbm [shape: bf16[8,8,512], index: 1, kind: input, shape index: {}]   ;;  %s3982_s2 = inlined_call_operand.hbm [shape: bf16[128,512], index: 2, kind: input, shape index: {}]   ;;  %s3983_s3 = inlined_call_operand.vmem [shape: s32[8,1], index: 3, kind: input, shape index: {}]   ;;  %s3984_s4 = inlined_call_operand.hbm [shape: f32[8,8,128], index: 4, kind: output, shape index: {0}]   ;;  %s3985_s5 = inlined_call_operand.hbm [shape: f32[8,128], index: 5, kind: output, shape index: {1}]   ;;  %s3986_s6 = inlined_call_operand.hbm [shape: f32[8,128], index: 6, kind: output, shape index: {2}]  }
   0x1   :  { %14 = vsyncpa [#allocation10], 0 }
   0x2   :  { %15 = vsyncpa [#allocation8], 0 }
   0x3   :  { %16 = vsyncpa [#allocation13], 0  ;;  %s3430_s21 = smov [#allocation6]  }
   0x4   :  { %s22_s22 = sshll.u32 %s3430_s21, 4  ;;  %s23_s22 = int_to_ptr.vmem [resolvable:$true] %s22_s22 }
   0x5   :  { %s3330_s23 = scalar_lea.vmem %s23_s22, 2048  ;;  %p3335_p1 = scmp.lt.s32.totalorder %s23_s22, %s23_s22 }
   0x6   :  { %p3331_p0 = scmp.ne.s32.totalorder %s23_s22, %s3330_s23  ;;  %p3336_p2 = scmp.lt.s32.totalorder %s3330_s23, %s3330_s23 }
   0x8   :  { %p3337_p3 = por %p3336_p2, %p3335_p1 }
   0xa   :  { %p3338_p4 = pnand %p3337_p3, %p3331_p0 }
   0xc   :  { %3341 = shalt.err (!%p3338_p4)
}
   0xd   :  { %s3431_s24 = smov 256   ;;  %s3432_s25 = smov 16  }
   0xe   :  { %28 = dma.hbm_to_vmem [thread:$0]  %s3981_s1, 2048, %s23_s22, [#allocation7], %s3431_s24, %s3431_s24, %s3432_s25  }
   0xf   :  { %s3433_s28 = smov [#allocation9]  }
  0x10   :  { %s34_s29 = sshll.u32 %s3433_s28, 4  ;;  %s35_s29 = int_to_ptr.vmem [resolvable:$true] %s34_s29 }
  0x11   :  { %s3350_s30 = scalar_lea.vmem %s35_s29, 4096  ;;  %p3355_p6 = scmp.lt.s32.totalorder %s35_s29, %s35_s29 }
  0x12   :  { %p3351_p5 = scmp.ne.s32.totalorder %s35_s29, %s3350_s30  ;;  %p3356_p7 = scmp.lt.s32.totalorder %s3350_s30, %s3350_s30 }
  0x14   :  { %p3357_p8 = por %p3356_p7, %p3355_p6 }
  0x16   :  { %p3358_p9 = pnand %p3357_p8, %p3351_p5 }
  0x18   :  { %3361 = shalt.err (!%p3358_p9)
}
  0x19   :  { %40 = dma.hbm_to_vmem [thread:$0]  %s3982_s2, 4096, %s35_s29, [#allocation10], %s3431_s24, %s3431_s24, %s3432_s25  }
  0x1a   :  { %3422 = dma.done.wait [#allocation7], 2048  }
  0x1b   :  { %3423 = vsyncadd [#allocation7], 4294965248 }
  0x1c   :  { %3424 = dma.done.wait [#allocation10], 4096  }
  0x1d   :  { %3425 = vsyncadd [#allocation10], 4294963200  ;;  %v3434_v0 = vmov 0.0   ;;  %p2769_p10 = scmp.gt.s32.totalorder %s3980_s0, 0 }
  0x1e   :  { %54 = vst [vmem:[#allocation2] sm:$0xff] %v3434_v0  ;;  %55 = vst [vmem:[#allocation3] sm:$0xff] %v3434_v0 }
  0x1f   :  { %61 = sbr.rel (%p2769_p10) target bundleno = 41 (0x29), region = 29 }
  0x24   :  { %v3435_v1 = vmov 0.0  }
  0x25   :  { %62 = vst [vmem:[#allocation11] sm:$0xff] %v3435_v1  ;;  %63 = vst [vmem:[#allocation11 + $0x8] sm:$0xff] %v3435_v1 }
  0x26   :  { %64 = vst [vmem:[#allocation11 + $0x10] sm:$0xff] %v3435_v1  ;;  %65 = vst [vmem:[#allocation11 + $0x18] sm:$0xff] %v3435_v1 }
  0x27   :  { %66 = vst [vmem:[#allocation11 + $0x20] sm:$0xff] %v3435_v1  ;;  %67 = vst [vmem:[#allocation11 + $0x28] sm:$0xff] %v3435_v1 }
  0x28   :  { %68 = vst [vmem:[#allocation11 + $0x30] sm:$0xff] %v3435_v1  ;;  %69 = vst [vmem:[#allocation11 + $0x38] sm:$0xff] %v3435_v1 }
  0x29 PF:  { %p2771_p11 = scmp.le.s32.totalorder %s3980_s0, 0 }
  0x2b   :  { %73 = sbr.rel (%p2771_p11) target bundleno = 2122 (0x84a), region = 33 }
  0x30   :  { %v3489_v2 = vld [vmem:[#allocation9 + $0xe4] ss:$16 sps:$4 sm:$0xff]   ;;  %v3491_v3 = vld [vmem:[#allocation9 + $0xec] ss:$16 sps:$4 sm:$0xff]   ;;  %v3436_v4 = vmov 0  }
  0x31   :  { %308 = vmatprep.mubr.bf16.mxu0 %v3436_v4  ;;  %349 = vmatprep.mubr.bf16.mxu1 %v3436_v4  ;;  %v3496_v5 = vld [vmem:[#allocation9 + $0xe0] ss:$16 sps:$4 sm:$0xff]   ;;  %v3498_v6 = vld [vmem:[#allocation9 + $0xe8] ss:$16 sps:$4 sm:$0xff]   ;;  %v3502_v7 = vld [vmem:[#allocation9 + $0xc4] ss:$16 sps:$4 sm:$0xff]  }
  0x32   :  { %276 = vmatprep.subr.bf16.mxu0 %v3489_v2  ;;  %3080 = vset.pattern.permute.xlu0 %v3436_v4  ;;  %v3507_v8 = vld [vmem:[#allocation9 + $0xcc] ss:$16 sps:$4 sm:$0xff]   ;;  %v3509_v9 = vld [vmem:[#allocation9 + $0xc0] ss:$16 sps:$4 sm:$0xff]   ;;  %v3512_v10 = vld [vmem:[#allocation9 + $0xc8] ss:$16 sps:$4 sm:$0xff]  }
  0x33   :  { %317 = vmatprep.subr.bf16.mxu1 %v3491_v3  ;;  %3081 = vset.pattern.permute.xlu1 %v3436_v4  ;;  %v3515_v11 = vld [vmem:[#allocation9 + $0xa4] ss:$16 sps:$4 sm:$0xff]   ;;  %v3517_v12 = vld [vmem:[#allocation9 + $0xac] ss:$16 sps:$4 sm:$0xff]   ;;  %v3519_v13 = vld [vmem:[#allocation9 + $0xa0] ss:$16 sps:$4 sm:$0xff]  }
  0x34   :  { %277 = vmatpush1.bf16.msra.mxu0 %v3496_v5  ;;  %318 = vmatpush1.bf16.msra.mxu1 %v3498_v6  ;;  %v3521_v14 = vld [vmem:[#allocation9 + $0xa8] ss:$16 sps:$4 sm:$0xff]   ;;  %v3525_v15 = vld [vmem:[#allocation9 + $0x84] ss:$16 sps:$4 sm:$0xff]   ;;  %v3529_v16 = vld [vmem:[#allocation9 + $0x8c] ss:$16 sps:$4 sm:$0xff]  }
  0x35   :  { %278 = vmatprep.subr.bf16.mxu0 %v3502_v7  ;;  %319 = vmatprep.subr.bf16.mxu1 %v3507_v8  ;;  %v3531_v17 = vld [vmem:[#allocation9 + $0x80] ss:$16 sps:$4 sm:$0xff]   ;;  %v3535_v18 = vld [vmem:[#allocation9 + $0x88] ss:$16 sps:$4 sm:$0xff]   ;;  %v3537_v19 = vld [vmem:[#allocation9 + $0x64] ss:$16 sps:$4 sm:$0xff]  }
  0x36   :  { %v3541_v20 = vld [vmem:[#allocation9 + $0x6c] ss:$16 sps:$4 sm:$0xff]   ;;  %v3543_v21 = vld [vmem:[#allocation9 + $0x60] ss:$16 sps:$4 sm:$0xff]   ;;  %v3545_v22 = vld [vmem:[#allocation9 + $0x68] ss:$16 sps:$4 sm:$0xff]  }
  0x37   :  { %v3549_v23 = vld [vmem:[#allocation9 + $0x44] ss:$16 sps:$4 sm:$0xff]   ;;  %v3553_v24 = vld [vmem:[#allocation9 + $0x4c] ss:$16 sps:$4 sm:$0xff]   ;;  %v3557_v25 = vld [vmem:[#allocation9 + $0x40] ss:$16 sps:$4 sm:$0xff]  }
  0x38   :  { %279 = vmatpush1.bf16.msra.mxu0 %v3509_v9  ;;  %320 = vmatpush1.bf16.msra.mxu1 %v3512_v10  ;;  %v3559_v26 = vld [vmem:[#allocation9 + $0x48] ss:$16 sps:$4 sm:$0xff]   ;;  %v3563_v27 = vld [vmem:[#allocation9 + $0x24] ss:$16 sps:$4 sm:$0xff]   ;;  %v3565_v28 = vld [vmem:[#allocation9 + $0x2c] ss:$16 sps:$4 sm:$0xff]  }
  0x39   :  { %280 = vmatprep.subr.bf16.mxu0 %v3515_v11  ;;  %321 = vmatprep.subr.bf16.mxu1 %v3517_v12  ;;  %v3570_v29 = vld [vmem:[%s3983_s3] sm:$0xff]  ;;  %v3574_v31 = vld [vmem:[#allocation9 + $0x28] ss:$16 sps:$4 sm:$0xff]   ;;  %v3579_v33 = vld [vmem:[#allocation9 + $0xc] ss:$16 sps:$4 sm:$0xff]  }
  0x3a   :  { %v3572_v30 = vld [vmem:[#allocation9 + $0x20] ss:$16 sps:$4 sm:$0xff]   ;;  %vm394_vm0 = vcmp.gt.s32.totalorder %v3570_v29, 0  ;;  %v3577_v32 = vld [vmem:[#allocation9 + $0x4] ss:$16 sps:$4 sm:$0xff]   ;;  %vm723_vm1 = vcmp.gt.s32.totalorder %v3570_v29, 1 }
  0x3b   :  { %v395_v34 = vsel %vm394_vm0, 1, %v3436_v4  ;;  %v3587_v35 = vld [vmem:[#allocation9] ss:$16 sps:$4 sm:$0xff]   ;;  %v3589_v36 = vld [vmem:[#allocation9 + $0x8] ss:$16 sps:$4 sm:$0xff]   ;;  %v724_v38 = vsel %vm723_vm1, 1, %v3436_v4 }
  0x3c   :  { %281 = vmatpush1.bf16.msra.mxu0 %v3519_v13  ;;  %322 = vmatpush1.bf16.msra.mxu1 %v3521_v14  ;;  %v3591_v37 = vld [vmem:[#allocation2] sm:$0xff]  ;;  %vm1713_vm2 = vcmp.gt.s32.totalorder %v3570_v29, 4  ;;  %vm2373_vm3 = vcmp.gt.s32.totalorder %v3570_v29, 6  ;;  %v77_v42 = vld [vmem:[#allocation6] sm:$0xff]  ;;  %v78_v43 = vld [vmem:[#allocation6 + $0x8] sm:$0xff]  ;;  %vm1053_vm5 = vcmp.gt.s32.totalorder %v3570_v29, 2 }
  0x3d   :  { %282 = vmatprep.subr.bf16.mxu0 %v3525_v15  ;;  %323 = vmatprep.subr.bf16.mxu1 %v3529_v16  ;;  %v83_v39 = vpack.c.bf16 %v3591_v37, %v3591_v37  ;;  %v1714_v40 = vsel %vm1713_vm2, 1, %v3436_v4  ;;  %v2374_v41 = vsel %vm2373_vm3, 1, %v3436_v4  ;;  %v79_v44 = vunpack.c.l.bf16 %v77_v42 }
  0x3e   :  { %397 = vperm.xlu0 %3080, %v395_v34   ;;  %v81_v45 = vunpack.c.l.bf16 %v78_v43  ;;  %v80_v46 = vunpack.c.h.bf16 %v77_v42  ;;  %v82_v61 = vunpack.c.h.bf16 %v78_v43  ;;  %vm1383_vm6 = vcmp.gt.s32.totalorder %v3570_v29, 3 }
  0x3f   :  { %vm2043_vm7 = vcmp.gt.s32.totalorder %v3570_v29, 5  ;;  %vm2703_vm8 = vcmp.gt.s32.totalorder %v3570_v29, 7 }
  0x40   :  { %283 = vmatpush1.bf16.msra.mxu0 %v3531_v17  ;;  %324 = vmatpush1.bf16.msra.mxu1 %v3535_v18 }
  0x41   :  { %284 = vmatprep.subr.bf16.mxu0 %v3537_v19  ;;  %325 = vmatprep.subr.bf16.mxu1 %v3541_v20 }
  0x42   :  { %726 = vperm.xlu0 %3080, %v724_v38  }
  0x44   :  { %285 = vmatpush1.bf16.msra.mxu0 %v3543_v21  ;;  %326 = vmatpush1.bf16.msra.mxu1 %v3545_v22 }
  0x45   :  { %286 = vmatprep.subr.bf16.mxu0 %v3549_v23  ;;  %327 = vmatprep.subr.bf16.mxu1 %v3553_v24 }
  0x46   :  { %1716 = vperm.xlu0 %3080, %v1714_v40  }
  0x48   :  { %287 = vmatpush1.bf16.msra.mxu0 %v3557_v25  ;;  %328 = vmatpush1.bf16.msra.mxu1 %v3559_v26 }
  0x49   :  { %288 = vmatprep.subr.bf16.mxu0 %v3563_v27  ;;  %329 = vmatprep.subr.bf16.mxu1 %v3565_v28 }
  0x4a   :  { %2376 = vperm.xlu0 %3080, %v2374_v41  }
  0x4c   :  { %289 = vmatpush1.bf16.msra.mxu0 %v3572_v30  ;;  %330 = vmatpush1.bf16.msra.mxu1 %v3574_v31 }
  0x4d   :  { %290 = vmatprep.subr.bf16.mxu0 %v3577_v32  ;;  %331 = vmatprep.subr.bf16.mxu1 %v3579_v33 }
  0x50   :  { %291 = vmatpush1.bf16.msra.mxu0 %v3587_v35  ;;  %332 = vmatpush1.bf16.msra.mxu1 %v3589_v36 }
  0x51   :  { %604 = vmatprep.subr.bf16.mxu0 %v3489_v2  ;;  %645 = vmatprep.subr.bf16.mxu1 %v3491_v3 }
  0x53   :  { %309 = vmatmul.mubr.bf16.vlgmr.msra.gmra.mxu0 %v83_v39  ;;  %350 = vmatmul.mubr.bf16.vlgmr.msra.gmra.mxu1 %v83_v39 }
  0x54   :  { %605 = vmatpush1.bf16.msra.mxu0 %v3496_v5  ;;  %646 = vmatpush1.bf16.msra.mxu1 %v3498_v6 }
  0x55   :  { %606 = vmatprep.subr.bf16.mxu0 %v3502_v7  ;;  %647 = vmatprep.subr.bf16.mxu1 %v3507_v8 }
  0x56   :  { %636 = vmatprep.mubr.bf16.mxu0 %v3436_v4  ;;  %677 = vmatprep.mubr.bf16.mxu1 %v3436_v4 }
  0x58   :  { %607 = vmatpush1.bf16.msra.mxu0 %v3509_v9  ;;  %648 = vmatpush1.bf16.msra.mxu1 %v3512_v10 }
  0x59   :  { %608 = vmatprep.subr.bf16.mxu0 %v3515_v11  ;;  %649 = vmatprep.subr.bf16.mxu1 %v3517_v12 }
  0x5c   :  { %609 = vmatpush1.bf16.msra.mxu0 %v3519_v13  ;;  %650 = vmatpush1.bf16.msra.mxu1 %v3521_v14 }
  0x5d   :  { %610 = vmatprep.subr.bf16.mxu0 %v3525_v15  ;;  %651 = vmatprep.subr.bf16.mxu1 %v3529_v16 }
  0x60   :  { %611 = vmatpush1.bf16.msra.mxu0 %v3531_v17  ;;  %652 = vmatpush1.bf16.msra.mxu1 %v3535_v18 }
  0x61   :  { %612 = vmatprep.subr.bf16.mxu0 %v3537_v19  ;;  %653 = vmatprep.subr.bf16.mxu1 %v3541_v20 }
  0x64   :  { %613 = vmatpush1.bf16.msra.mxu0 %v3543_v21  ;;  %654 = vmatpush1.bf16.msra.mxu1 %v3545_v22 }
  0x65   :  { %614 = vmatprep.subr.bf16.mxu0 %v3549_v23  ;;  %655 = vmatprep.subr.bf16.mxu1 %v3553_v24 }
  0x68   :  { %615 = vmatpush1.bf16.msra.mxu0 %v3557_v25  ;;  %656 = vmatpush1.bf16.msra.mxu1 %v3559_v26 }
  0x69   :  { %616 = vmatprep.subr.bf16.mxu0 %v3563_v27  ;;  %657 = vmatprep.subr.bf16.mxu1 %v3565_v28 }
  0x6c   :  { %617 = vmatpush1.bf16.msra.mxu0 %v3572_v30  ;;  %658 = vmatpush1.bf16.msra.mxu1 %v3574_v31 }
  0x6d   :  { %618 = vmatprep.subr.bf16.mxu0 %v3577_v32  ;;  %659 = vmatprep.subr.bf16.mxu1 %v3579_v33 }
  0x70   :  { %619 = vmatpush1.bf16.msra.mxu0 %v3587_v35  ;;  %660 = vmatpush1.bf16.msra.mxu1 %v3589_v36 }
  0x71   :  { %934 = vmatprep.subr.bf16.mxu0 %v3489_v2  ;;  %975 = vmatprep.subr.bf16.mxu1 %v3491_v3 }
 0x113   :  { %v310_v47 = vpop.f32.mrf.mxu0  ;;  %v351_v48 = vpop.f32.mrf.mxu1 }
 0x114   :  { %v358_v49 = vadd.f32 %v310_v47, %v79_v44  ;;  %v360_v50 = vadd.f32 %v351_v48, %v81_v45  ;;  %v398_v48 = vpop.permute.xlu0 %397 }
 0x115   :  { %v312_v51 = vpop.f32.mrf.mxu0  ;;  %v353_v52 = vpop.f32.mrf.mxu1  ;;  %vm399_vm4 = vcmp.eq.s32.totalorder %v398_v48, 1 }
 0x116   :  { %v2804_v53 = vmul.f32 -1.442695, %v358_v49  ;;  %v2806_v54 = vmul.f32 -1.442695, %v360_v50  ;;  %v359_v55 = vadd.f32 %v312_v51, %v80_v46  ;;  %v361_v62 = vadd.f32 %v353_v52, %v82_v61  ;;  %v76_v46 = vld [vmem:[#allocation3] sm:$0xff] }
 0x117   :  { %v314_v56 = vpop.f32.mrf.mxu0  ;;  %v355_v57 = vpop.f32.mrf.mxu1  ;;  %v2044_v61 = vsel %vm2043_vm7, 1, %v3436_v4 }
 0x118   :  { %3178 = vpow2.f32 %v2804_v53  ;;  %v2805_v58 = vmul.f32 -1.442695, %v359_v55  ;;  %v2807_v1 = vmul.f32 -1.442695, %v361_v62  ;;  %v406_v62 = vld [vmem:[#allocation6 + $0x18] sm:$0xff] }
 0x119   :  { %3180 = vpow2.f32 %v2806_v54  ;;  %v315_v59 = vpop.f32.mrf.mxu0  ;;  %v356_v60 = vpop.f32.mrf.mxu1 }
 0x11a   :  { %3182 = vpow2.f32 %v2805_v58  ;;  %v1384_v60 = vsel %vm1383_vm6, 1, %v3436_v4 }
 0x125   :  { %v3179_v63 = vpop.eup %3178 }
 0x126   :  { %v3181_v0 = vpop.eup %3180  ;;  %v374_v40 = vadd.f32 1.0, %v3179_v63 }
 0x127   :  { %v3183_v34 = vpop.eup %3182  ;;  %v376_v38 = vadd.f32 1.0, %v3181_v0  ;;  %v409_v0 = vunpack.c.l.bf16 %v406_v62 }
 0x128   :  { %v375_v39 = vadd.f32 1.0, %v3183_v34 }
 0x129   :  { %3184 = vrcp.f32 %v376_v38 }
 0x12a   :  { %3186 = vpow2.f32 %v2807_v1 }
 0x12b   :  { %3188 = vrcp.f32 %v375_v39 }
 0x12c   :  { %3190 = vrcp.f32 %v374_v40 }
 0x136   :  { %v3185_v41 = vpop.eup %3184 }
 0x137   :  { %v3187_v42 = vpop.eup %3186  ;;  %v386_v44 = vmul.f32 2.0, %v3185_v41 }
 0x138   :  { %v3189_v45 = vpop.eup %3188  ;;  %v377_v49 = vadd.f32 1.0, %v3187_v42 }
 0x139   :  { %v2808_v47 = vadd.f32 -1.0, %v386_v44  ;;  %v3191_v43 = vpop.eup %3190  ;;  %v388_v50 = vmul.f32 %v3189_v45, %v76_v46 }
 0x13a   :  { %3192 = vrcp.f32 %v377_v49 }
 0x13b   :  { %v389_v51 = vmul.f32 %v3191_v43, %v2808_v47 }
 0x13d   :  { %v390_v52 = vadd.f32 %v389_v51, %v388_v50  ;;  %v410_v50 = vunpack.c.h.bf16 %v406_v62 }
 0x13f   :  { %3194 = vtanh.f32 %v390_v52  ;;  %v3642_v53 = vsel %vm399_vm4, %v390_v52, %v76_v46 }
 0x147   :  { %v3193_v54 = vpop.eup %3192 }
 0x14c   :  { %v3195_v55 = vpop.eup %3194 }
 0x14d   :  { %v392_v56 = vmul.f32 %v3195_v55, %v3193_v54 }
 0x14f   :  { %v3645_v57 = vsel %vm399_vm4, %v392_v56, %v3591_v37  ;;  %v402_v58 = vsel %vm399_vm4, %v392_v56, 0.0  ;;  %v1054_v37 = vsel %vm1053_vm5, 1, %v3436_v4 }
 0x150   :  { %403 = vst [vmem:[#allocation11] sm:$0xff] %v402_v58  ;;  %v411_v59 = vpack.c.bf16 %v3645_v57, %v3645_v57  ;;  %1056 = vperm.xlu1 %3081, %v1054_v37  }
 0x152   :  { %637 = vmatmul.mubr.bf16.vlgmr.msra.gmra.mxu0 %v411_v59  ;;  %678 = vmatmul.mubr.bf16.vlgmr.msra.gmra.mxu1 %v411_v59 }
 0x153   :  { %935 = vmatpush1.bf16.msra.mxu0 %v3496_v5  ;;  %976 = vmatpush1.bf16.msra.mxu1 %v3498_v6 }
 0x154   :  { %936 = vmatprep.subr.bf16.mxu0 %v3502_v7  ;;  %977 = vmatprep.subr.bf16.mxu1 %v3507_v8 }
 0x155   :  { %966 = vmatprep.mubr.bf16.mxu0 %v3436_v4  ;;  %1007 = vmatprep.mubr.bf16.mxu1 %v3436_v4 }
 0x156   :  { %1386 = vperm.xlu1 %3081, %v1384_v60  }
 0x157   :  { %937 = vmatpush1.bf16.msra.mxu0 %v3509_v9  ;;  %978 = vmatpush1.bf16.msra.mxu1 %v3512_v10 }
 0x158   :  { %938 = vmatprep.subr.bf16.mxu0 %v3515_v11  ;;  %979 = vmatprep.subr.bf16.mxu1 %v3517_v12 }
 0x15a   :  { %2046 = vperm.xlu1 %3081, %v2044_v61  }
 0x15b   :  { %939 = vmatpush1.bf16.msra.mxu0 %v3519_v13  ;;  %980 = vmatpush1.bf16.msra.mxu1 %v3521_v14 }
 0x15c   :  { %940 = vmatprep.subr.bf16.mxu0 %v3525_v15  ;;  %981 = vmatprep.subr.bf16.mxu1 %v3529_v16 }
 0x15f   :  { %941 = vmatpush1.bf16.msra.mxu0 %v3531_v17  ;;  %982 = vmatpush1.bf16.msra.mxu1 %v3535_v18 }
 0x160   :  { %942 = vmatprep.subr.bf16.mxu0 %v3537_v19  ;;  %983 = vmatprep.subr.bf16.mxu1 %v3541_v20 }
 0x163   :  { %943 = vmatpush1.bf16.msra.mxu0 %v3543_v21  ;;  %984 = vmatpush1.bf16.msra.mxu1 %v3545_v22 }
 0x164   :  { %944 = vmatprep.subr.bf16.mxu0 %v3549_v23  ;;  %985 = vmatprep.subr.bf16.mxu1 %v3553_v24 }
 0x167   :  { %945 = vmatpush1.bf16.msra.mxu0 %v3557_v25  ;;  %986 = vmatpush1.bf16.msra.mxu1 %v3559_v26 }
 0x168   :  { %946 = vmatprep.subr.bf16.mxu0 %v3563_v27  ;;  %987 = vmatprep.subr.bf16.mxu1 %v3565_v28 }
 0x16b   :  { %947 = vmatpush1.bf16.msra.mxu0 %v3572_v30  ;;  %988 = vmatpush1.bf16.msra.mxu1 %v3574_v31 }
 0x16c   :  { %948 = vmatprep.subr.bf16.mxu0 %v3577_v32  ;;  %989 = vmatprep.subr.bf16.mxu1 %v3579_v33 }
 0x16f   :  { %949 = vmatpush1.bf16.msra.mxu0 %v3587_v35  ;;  %990 = vmatpush1.bf16.msra.mxu1 %v3589_v36 }
 0x170   :  { %1264 = vmatprep.subr.bf16.mxu0 %v3489_v2  ;;  %1305 = vmatprep.subr.bf16.mxu1 %v3491_v3  ;;  %v2704_v2 = vsel %vm2703_vm8, 1, %v3436_v4  ;;  %v405_v3 = vld [vmem:[#allocation6 + $0x10] sm:$0xff] }
 0x171   :  { %2706 = vperm.xlu1 %3081, %v2704_v2   ;;  %v407_v63 = vunpack.c.l.bf16 %v405_v3  ;;  %v408_v1 = vunpack.c.h.bf16 %v405_v3 }
 0x212   :  { %v638_v34 = vpop.f32.mrf.mxu0  ;;  %v679_v38 = vpop.f32.mrf.mxu1 }
 0x213   :  { %v686_v39 = vadd.f32 %v638_v34, %v407_v63  ;;  %v688_v40 = vadd.f32 %v679_v38, %v409_v0  ;;  %v727_v38 = vpop.permute.xlu0 %726 }
 0x214   :  { %v640_v41 = vpop.f32.mrf.mxu0  ;;  %v681_v42 = vpop.f32.mrf.mxu1  ;;  %vm728_vm9 = vcmp.eq.s32.totalorder %v727_v38, 1  ;;  %v3767_v38 = vld [vmem:[#allocation9 + $0xa4] ss:$16 sps:$4 sm:$0xff]  }
 0x215   :  { %v2841_v44 = vmul.f32 -1.442695, %v686_v39  ;;  %v2843_v45 = vmul.f32 -1.442695, %v688_v40  ;;  %v687_v46 = vadd.f32 %v640_v41, %v408_v1  ;;  %v689_v51 = vadd.f32 %v681_v42, %v410_v50 }
 0x216   :  { %v642_v47 = vpop.f32.mrf.mxu0  ;;  %v683_v29 = vpop.f32.mrf.mxu1 }
 0x217   :  { %3196 = vpow2.f32 %v2841_v44  ;;  %v2842_v48 = vmul.f32 -1.442695, %v687_v46  ;;  %v2844_v55 = vmul.f32 -1.442695, %v689_v51 }
 0x218   :  { %3198 = vpow2.f32 %v2843_v45  ;;  %v643_v43 = vpop.f32.mrf.mxu0  ;;  %v684_v49 = vpop.f32.mrf.mxu1 }
 0x219   :  { %3200 = vpow2.f32 %v2842_v48  ;;  %v1057_v48 = vpop.permute.xlu1 %1056 }
 0x21a   :  { %vm1058_vm10 = vcmp.eq.s32.totalorder %v1057_v48, 1 }
 0x224   :  { %v3197_v52 = vpop.eup %3196 }
 0x225   :  { %v3199_v54 = vpop.eup %3198  ;;  %v702_v37 = vadd.f32 1.0, %v3197_v52 }
 0x226   :  { %v3201_v56 = vpop.eup %3200  ;;  %v704_v58 = vadd.f32 1.0, %v3199_v54 }
 0x227   :  { %v703_v59 = vadd.f32 1.0, %v3201_v56 }
 0x228   :  { %3202 = vrcp.f32 %v704_v58 }
 0x229   :  { %3204 = vpow2.f32 %v2844_v55 }
 0x22a   :  { %3206 = vrcp.f32 %v703_v59 }
 0x22b   :  { %3208 = vrcp.f32 %v702_v37 }
 0x235   :  { %v3203_v60 = vpop.eup %3202 }
 0x236   :  { %v3205_v61 = vpop.eup %3204  ;;  %v714_v2 = vmul.f32 2.0, %v3203_v60 }
 0x237   :  { %v3207_v3 = vpop.eup %3206  ;;  %v705_v1 = vadd.f32 1.0, %v3205_v61  ;;  %v3743_v61 = vld [vmem:[#allocation9 + $0xe4] ss:$16 sps:$4 sm:$0xff]  }
 0x238   :  { %v2845_v63 = vadd.f32 -1.0, %v714_v2  ;;  %v3209_v0 = vpop.eup %3208  ;;  %v716_v34 = vmul.f32 %v3207_v3, %v3642_v53  ;;  %v3745_v2 = vld [vmem:[#allocation9 + $0xec] ss:$16 sps:$4 sm:$0xff]   ;;  %v3747_v3 = vld [vmem:[#allocation9 + $0xe0] ss:$16 sps:$4 sm:$0xff]  }
 0x239   :  { %3210 = vrcp.f32 %v705_v1  ;;  %v3757_v1 = vld [vmem:[#allocation9 + $0xcc] ss:$16 sps:$4 sm:$0xff]  }
 0x23a   :  { %v717_v62 = vmul.f32 %v3209_v0, %v2845_v63  ;;  %v3749_v63 = vld [vmem:[#allocation9 + $0xe8] ss:$16 sps:$4 sm:$0xff]   ;;  %v3755_v0 = vld [vmem:[#allocation9 + $0xc4] ss:$16 sps:$4 sm:$0xff]  }
 0x23c   :  { %v718_v39 = vadd.f32 %v717_v62, %v716_v34  ;;  %v3759_v62 = vld [vmem:[#allocation9 + $0xc0] ss:$16 sps:$4 sm:$0xff]   ;;  %v3761_v34 = vld [vmem:[#allocation9 + $0xc8] ss:$16 sps:$4 sm:$0xff]  }
 0x23e   :  { %3212 = vtanh.f32 %v718_v39  ;;  %v3693_v40 = vsel %vm728_vm9, %v718_v39, %v3642_v53  ;;  %v3769_v39 = vld [vmem:[#allocation9 + $0xac] ss:$16 sps:$4 sm:$0xff]  }
 0x246   :  { %v3211_v41 = vpop.eup %3210 }
 0x24b   :  { %v3213_v42 = vpop.eup %3212 }
 0x24c   :  { %v720_v44 = vmul.f32 %v3213_v42, %v3211_v41  ;;  %v3773_v41 = vld [vmem:[#allocation9 + $0xa8] ss:$16 sps:$4 sm:$0xff]   ;;  %v3779_v42 = vld [vmem:[#allocation9 + $0x84] ss:$16 sps:$4 sm:$0xff]  }
 0x24e   :  { %v3696_v45 = vsel %vm728_vm9, %v720_v44, %v3645_v57  ;;  %v731_v46 = vsel %vm728_vm9, %v720_v44, 0.0  ;;  %v3781_v44 = vld [vmem:[#allocation9 + $0x8c] ss:$16 sps:$4 sm:$0xff]  }
 0x24f   :  { %733 = vst [vmem:[#allocation11 + $0x8] sm:$0xff] %v731_v46  ;;  %v741_v47 = vpack.c.bf16 %v3696_v45, %v3696_v45  ;;  %v3785_v46 = vld [vmem:[#allocation9 + $0x88] ss:$16 sps:$4 sm:$0xff]  }
 0x251   :  { %967 = vmatmul.mubr.bf16.vlgmr.msra.gmra.mxu0 %v741_v47  ;;  %1008 = vmatmul.mubr.bf16.vlgmr.msra.gmra.mxu1 %v741_v47  ;;  %v3791_v47 = vld [vmem:[#allocation9 + $0x60] ss:$16 sps:$4 sm:$0xff]  }
 0x252   :  { %1265 = vmatpush1.bf16.msra.mxu0 %v3496_v5  ;;  %1306 = vmatpush1.bf16.msra.mxu1 %v3498_v6  ;;  %v735_v5 = vld [vmem:[#allocation6 + $0x20] sm:$0xff]  ;;  %v736_v6 = vld [vmem:[#allocation6 + $0x28] sm:$0xff] }
 0x253   :  { %1266 = vmatprep.subr.bf16.mxu0 %v3502_v7  ;;  %1307 = vmatprep.subr.bf16.mxu1 %v3507_v8  ;;  %v737_v7 = vunpack.c.l.bf16 %v735_v5  ;;  %v739_v8 = vunpack.c.l.bf16 %v736_v6 }
 0x254   :  { %1296 = vmatprep.mubr.bf16.mxu0 %v3436_v4  ;;  %1337 = vmatprep.mubr.bf16.mxu1 %v3436_v4 }
 0x256   :  { %1267 = vmatpush1.bf16.msra.mxu0 %v3509_v9  ;;  %1308 = vmatpush1.bf16.msra.mxu1 %v3512_v10  ;;  %v738_v9 = vunpack.c.h.bf16 %v735_v5  ;;  %v3793_v5 = vld [vmem:[#allocation9 + $0x64] ss:$16 sps:$4 sm:$0xff]  }
 0x257   :  { %1268 = vmatprep.subr.bf16.mxu0 %v3515_v11  ;;  %1309 = vmatprep.subr.bf16.mxu1 %v3517_v12 }
 0x25a   :  { %1269 = vmatpush1.bf16.msra.mxu0 %v3519_v13  ;;  %1310 = vmatpush1.bf16.msra.mxu1 %v3521_v14 }
 0x25b   :  { %1270 = vmatprep.subr.bf16.mxu0 %v3525_v15  ;;  %1311 = vmatprep.subr.bf16.mxu1 %v3529_v16 }
 0x25e   :  { %1271 = vmatpush1.bf16.msra.mxu0 %v3531_v17  ;;  %1312 = vmatpush1.bf16.msra.mxu1 %v3535_v18 }
 0x25f   :  { %1272 = vmatprep.subr.bf16.mxu0 %v3537_v19  ;;  %1313 = vmatprep.subr.bf16.mxu1 %v3541_v20 }
 0x262   :  { %1273 = vmatpush1.bf16.msra.mxu0 %v3543_v21  ;;  %1314 = vmatpush1.bf16.msra.mxu1 %v3545_v22 }
 0x263   :  { %1274 = vmatprep.subr.bf16.mxu0 %v3549_v23  ;;  %1315 = vmatprep.subr.bf16.mxu1 %v3553_v24  ;;  %v740_v24 = vunpack.c.h.bf16 %v736_v6  ;;  %v3795_v6 = vld [vmem:[#allocation9 + $0x68] ss:$16 sps:$4 sm:$0xff]  }
 0x266   :  { %1275 = vmatpush1.bf16.msra.mxu0 %v3557_v25  ;;  %1316 = vmatpush1.bf16.msra.mxu1 %v3559_v26 }
 0x267   :  { %1276 = vmatprep.subr.bf16.mxu0 %v3563_v27  ;;  %1317 = vmatprep.subr.bf16.mxu1 %v3565_v28 }
 0x26a   :  { %1277 = vmatpush1.bf16.msra.mxu0 %v3572_v30  ;;  %1318 = vmatpush1.bf16.msra.mxu1 %v3574_v31 }
 0x26b   :  { %1278 = vmatprep.subr.bf16.mxu0 %v3577_v32  ;;  %1319 = vmatprep.subr.bf16.mxu1 %v3579_v33 }
 0x26e   :  { %1279 = vmatpush1.bf16.msra.mxu0 %v3587_v35  ;;  %1320 = vmatpush1.bf16.msra.mxu1 %v3589_v36 }
 0x26f   :  { %1594 = vmatprep.subr.bf16.mxu0 %v3743_v61  ;;  %1635 = vmatprep.subr.bf16.mxu1 %v3745_v2 }
 0x311   :  { %v968_v10 = vpop.f32.mrf.mxu0  ;;  %v1009_v11 = vpop.f32.mrf.mxu1 }
 0x312   :  { %v1016_v12 = vadd.f32 %v968_v10, %v737_v7  ;;  %v1018_v13 = vadd.f32 %v1009_v11, %v739_v8  ;;  %v3797_v7 = vld [vmem:[#allocation9 + $0x6c] ss:$16 sps:$4 sm:$0xff]   ;;  %v3799_v8 = vld [vmem:[#allocation9 + $0x44] ss:$16 sps:$4 sm:$0xff]   ;;  %v3807_v10 = vld [vmem:[#allocation9 + $0x40] ss:$16 sps:$4 sm:$0xff]  }
 0x313   :  { %v970_v14 = vpop.f32.mrf.mxu0  ;;  %v1011_v15 = vpop.f32.mrf.mxu1  ;;  %v3809_v11 = vld [vmem:[#allocation9 + $0x48] ss:$16 sps:$4 sm:$0xff]  }
 0x314   :  { %v2878_v16 = vmul.f32 -1.442695, %v1016_v12  ;;  %v2880_v17 = vmul.f32 -1.442695, %v1018_v13  ;;  %v1017_v18 = vadd.f32 %v970_v14, %v738_v9  ;;  %v1019_v25 = vadd.f32 %v1011_v15, %v740_v24  ;;  %v3802_v9 = vld [vmem:[#allocation9 + $0x4c] ss:$16 sps:$4 sm:$0xff]  }
 0x315   :  { %v972_v19 = vpop.f32.mrf.mxu0  ;;  %v1013_v20 = vpop.f32.mrf.mxu1  ;;  %v3813_v12 = vld [vmem:[#allocation9 + $0x24] ss:$16 sps:$4 sm:$0xff]   ;;  %v3815_v13 = vld [vmem:[#allocation9 + $0x2c] ss:$16 sps:$4 sm:$0xff]   ;;  %v3819_v14 = vld [vmem:[#allocation9 + $0x20] ss:$16 sps:$4 sm:$0xff]  }
 0x316   :  { %3214 = vpow2.f32 %v2878_v16  ;;  %v2879_v21 = vmul.f32 -1.442695, %v1017_v18  ;;  %v2881_v28 = vmul.f32 -1.442695, %v1019_v25  ;;  %v3821_v15 = vld [vmem:[#allocation9 + $0x28] ss:$16 sps:$4 sm:$0xff]  }
 0x317   :  { %3216 = vpow2.f32 %v2880_v17  ;;  %v973_v22 = vpop.f32.mrf.mxu0  ;;  %v1014_v23 = vpop.f32.mrf.mxu1  ;;  %v3825_v16 = vld [vmem:[#allocation9 + $0x4] ss:$16 sps:$4 sm:$0xff]   ;;  %v3827_v17 = vld [vmem:[#allocation9 + $0xc] ss:$16 sps:$4 sm:$0xff]   ;;  %v3831_v18 = vld [vmem:[#allocation9] ss:$16 sps:$4 sm:$0xff]  }
 0x318   :  { %3218 = vpow2.f32 %v2879_v21  ;;  %v3833_v19 = vld [vmem:[#allocation9 + $0x8] ss:$16 sps:$4 sm:$0xff]   ;;  %v1065_v20 = vld [vmem:[#allocation6 + $0x30] sm:$0xff] }
 0x319   :  { %v1066_v21 = vld [vmem:[#allocation6 + $0x38] sm:$0xff]  ;;  %v1067_v22 = vunpack.c.l.bf16 %v1065_v20  ;;  %v1068_v24 = vunpack.c.h.bf16 %v1065_v20 }
 0x31a   :  { %v1069_v23 = vunpack.c.l.bf16 %v1066_v21 }
 0x323   :  { %v3215_v26 = vpop.eup %3214 }
 0x324   :  { %v3217_v27 = vpop.eup %3216  ;;  %v1032_v33 = vadd.f32 1.0, %v3215_v26 }
 0x325   :  { %v3219_v30 = vpop.eup %3218  ;;  %v1034_v31 = vadd.f32 1.0, %v3217_v27 }
 0x326   :  { %v1033_v32 = vadd.f32 1.0, %v3219_v30 }
 0x327   :  { %3220 = vrcp.f32 %v1034_v31 }
 0x328   :  { %3222 = vpow2.f32 %v2881_v28 }
 0x329   :  { %3224 = vrcp.f32 %v1033_v32 }
 0x32a   :  { %3226 = vrcp.f32 %v1032_v33 }
 0x334   :  { %v3221_v35 = vpop.eup %3220 }
 0x335   :  { %v3223_v36 = vpop.eup %3222  ;;  %v1044_v53 = vmul.f32 2.0, %v3221_v35 }
 0x336   :  { %v3225_v57 = vpop.eup %3224  ;;  %v1035_v49 = vadd.f32 1.0, %v3223_v36 }
 0x337   :  { %v2882_v29 = vadd.f32 -1.0, %v1044_v53  ;;  %v3227_v43 = vpop.eup %3226  ;;  %v1046_v50 = vmul.f32 %v3225_v57, %v3693_v40 }
 0x338   :  { %3228 = vrcp.f32 %v1035_v49 }
 0x339   :  { %v1047_v51 = vmul.f32 %v3227_v43, %v2882_v29  ;;  %v1070_v43 = vunpack.c.h.bf16 %v1066_v21 }
 0x33b   :  { %v1048_v52 = vadd.f32 %v1047_v51, %v1046_v50 }
 0x33d   :  { %3230 = vtanh.f32 %v1048_v52  ;;  %v3734_v54 = vsel %vm1058_vm10, %v1048_v52, %v3693_v40  ;;  %v3771_v40 = vld [vmem:[#allocation9 + $0xa0] ss:$16 sps:$4 sm:$0xff]  }
 0x345   :  { %v3229_v55 = vpop.eup %3228 }
 0x34a   :  { %v3231_v56 = vpop.eup %3230 }
 0x34b   :  { %v1050_v58 = vmul.f32 %v3231_v56, %v3229_v55 }
 0x34d   :  { %v3737_v59 = vsel %vm1058_vm10, %v1050_v58, %v3696_v45  ;;  %v1061_v37 = vsel %vm1058_vm10, %v1050_v58, 0.0  ;;  %v3783_v45 = vld [vmem:[#allocation9 + $0x80] ss:$16 sps:$4 sm:$0xff]  }
 0x34e   :  { %1063 = vst [vmem:[#allocation11 + $0x10] sm:$0xff] %v1061_v37  ;;  %v1071_v60 = vpack.c.bf16 %v3737_v59, %v3737_v59 }
 0x350   :  { %1297 = vmatmul.mubr.bf16.vlgmr.msra.gmra.mxu0 %v1071_v60  ;;  %1338 = vmatmul.mubr.bf16.vlgmr.msra.gmra.mxu1 %v1071_v60 }
 0x351   :  { %1626 = vmatprep.mubr.bf16.mxu0 %v3436_v4  ;;  %1667 = vmatprep.mubr.bf16.mxu1 %v3436_v4 }
 0x352   :  { %1595 = vmatpush1.bf16.msra.mxu0 %v3747_v3  ;;  %1636 = vmatpush1.bf16.msra.mxu1 %v3749_v63 }
 0x353   :  { %1596 = vmatprep.subr.bf16.mxu0 %v3755_v0  ;;  %1637 = vmatprep.subr.bf16.mxu1 %v3757_v1 }
 0x356   :  { %1597 = vmatpush1.bf16.msra.mxu0 %v3759_v62  ;;  %1638 = vmatpush1.bf16.msra.mxu1 %v3761_v34 }
 0x357   :  { %1598 = vmatprep.subr.bf16.mxu0 %v3767_v38  ;;  %1639 = vmatprep.subr.bf16.mxu1 %v3769_v39 }
 0x35a   :  { %1599 = vmatpush1.bf16.msra.mxu0 %v3771_v40  ;;  %1640 = vmatpush1.bf16.msra.mxu1 %v3773_v41 }
 0x35b   :  { %1600 = vmatprep.subr.bf16.mxu0 %v3779_v42  ;;  %1641 = vmatprep.subr.bf16.mxu1 %v3781_v44 }
 0x35e   :  { %1601 = vmatpush1.bf16.msra.mxu0 %v3783_v45  ;;  %1642 = vmatpush1.bf16.msra.mxu1 %v3785_v46 }
 0x35f   :  { %1602 = vmatprep.subr.bf16.mxu0 %v3793_v5  ;;  %1643 = vmatprep.subr.bf16.mxu1 %v3797_v7 }
 0x362   :  { %1603 = vmatpush1.bf16.msra.mxu0 %v3791_v47  ;;  %1644 = vmatpush1.bf16.msra.mxu1 %v3795_v6 }
 0x363   :  { %1604 = vmatprep.subr.bf16.mxu0 %v3799_v8  ;;  %1645 = vmatprep.subr.bf16.mxu1 %v3802_v9 }
 0x366   :  { %1605 = vmatpush1.bf16.msra.mxu0 %v3807_v10  ;;  %1646 = vmatpush1.bf16.msra.mxu1 %v3809_v11 }
 0x367   :  { %1606 = vmatprep.subr.bf16.mxu0 %v3813_v12  ;;  %1647 = vmatprep.subr.bf16.mxu1 %v3815_v13 }
 0x36a   :  { %1607 = vmatpush1.bf16.msra.mxu0 %v3819_v14  ;;  %1648 = vmatpush1.bf16.msra.mxu1 %v3821_v15 }
 0x36b   :  { %1608 = vmatprep.subr.bf16.mxu0 %v3825_v16  ;;  %1649 = vmatprep.subr.bf16.mxu1 %v3827_v17 }
 0x36e   :  { %1609 = vmatpush1.bf16.msra.mxu0 %v3831_v18  ;;  %1650 = vmatpush1.bf16.msra.mxu1 %v3833_v19 }
 0x36f   :  { %1924 = vmatprep.subr.bf16.mxu0 %v3743_v61  ;;  %1965 = vmatprep.subr.bf16.mxu1 %v3745_v2 }
 0x410   :  { %v1298_v25 = vpop.f32.mrf.mxu0  ;;  %v1339_v26 = vpop.f32.mrf.mxu1 }
 0x411   :  { %v1346_v27 = vadd.f32 %v1298_v25, %v1067_v22  ;;  %v1348_v28 = vadd.f32 %v1339_v26, %v1069_v23 }
 0x412   :  { %v1300_v30 = vpop.f32.mrf.mxu0  ;;  %v1341_v31 = vpop.f32.mrf.mxu1 }
 0x413   :  { %v2915_v32 = vmul.f32 -1.442695, %v1346_v27  ;;  %v2917_v33 = vmul.f32 -1.442695, %v1348_v28  ;;  %v1347_v35 = vadd.f32 %v1300_v30, %v1068_v24  ;;  %v1349_v49 = vadd.f32 %v1341_v31, %v1070_v43  ;;  %v1387_v28 = vpop.permute.xlu1 %1386 }
 0x414   :  { %v1302_v36 = vpop.f32.mrf.mxu0  ;;  %v1343_v53 = vpop.f32.mrf.mxu1  ;;  %vm1388_vm11 = vcmp.eq.s32.totalorder %v1387_v28, 1 }
 0x415   :  { %3232 = vpow2.f32 %v2915_v32  ;;  %v2916_v57 = vmul.f32 -1.442695, %v1347_v35  ;;  %v2918_v52 = vmul.f32 -1.442695, %v1349_v49 }
 0x416   :  { %3234 = vpow2.f32 %v2917_v33  ;;  %v1303_v29 = vpop.f32.mrf.mxu0  ;;  %v1344_v48 = vpop.f32.mrf.mxu1 }
 0x417   :  { %3236 = vpow2.f32 %v2916_v57 }
 0x422   :  { %v3233_v50 = vpop.eup %3232 }
 0x423   :  { %v3235_v51 = vpop.eup %3234  ;;  %v1362_v37 = vadd.f32 1.0, %v3233_v50 }
 0x424   :  { %v3237_v55 = vpop.eup %3236  ;;  %v1364_v56 = vadd.f32 1.0, %v3235_v51 }
 0x425   :  { %v1363_v58 = vadd.f32 1.0, %v3237_v55 }
 0x426   :  { %3238 = vrcp.f32 %v1364_v56 }
 0x427   :  { %3240 = vpow2.f32 %v2918_v52 }
 0x428   :  { %3242 = vrcp.f32 %v1363_v58 }
 0x429   :  { %3244 = vrcp.f32 %v1362_v37 }
 0x433   :  { %v3239_v60 = vpop.eup %3238 }
 0x434   :  { %v3241_v20 = vpop.eup %3240  ;;  %v1374_v22 = vmul.f32 2.0, %v3239_v60 }
 0x435   :  { %v3243_v23 = vpop.eup %3242  ;;  %v1365_v26 = vadd.f32 1.0, %v3241_v20 }
 0x436   :  { %v2919_v24 = vadd.f32 -1.0, %v1374_v22  ;;  %v3245_v25 = vpop.eup %3244  ;;  %v1376_v27 = vmul.f32 %v3243_v23, %v3734_v54 }
 0x437   :  { %3246 = vrcp.f32 %v1365_v26 }
 0x438   :  { %v1377_v21 = vmul.f32 %v3245_v25, %v2919_v24 }
 0x43a   :  { %v1378_v30 = vadd.f32 %v1377_v21, %v1376_v27 }
 0x43c   :  { %3248 = vtanh.f32 %v1378_v30  ;;  %v3843_v31 = vsel %vm1388_vm11, %v1378_v30, %v3734_v54  ;;  %v1395_v54 = vld [vmem:[#allocation6 + $0x40] sm:$0xff] }
 0x43d   :  { %v1397_v29 = vunpack.c.l.bf16 %v1395_v54  ;;  %v1398_v43 = vunpack.c.h.bf16 %v1395_v54 }
 0x444   :  { %v3247_v32 = vpop.eup %3246 }
 0x449   :  { %v3249_v33 = vpop.eup %3248 }
 0x44a   :  { %v1380_v35 = vmul.f32 %v3249_v33, %v3247_v32 }
 0x44c   :  { %v3846_v36 = vsel %vm1388_vm11, %v1380_v35, %v3737_v59  ;;  %v1391_v53 = vsel %vm1388_vm11, %v1380_v35, 0.0  ;;  %v1396_v59 = vld [vmem:[#allocation6 + $0x48] sm:$0xff] }
 0x44d   :  { %1393 = vst [vmem:[#allocation11 + $0x18] sm:$0xff] %v1391_v53  ;;  %v1401_v57 = vpack.c.bf16 %v3846_v36, %v3846_v36  ;;  %v1399_v48 = vunpack.c.l.bf16 %v1396_v59  ;;  %v1400_v26 = vunpack.c.h.bf16 %v1396_v59 }
 0x44f   :  { %1627 = vmatmul.mubr.bf16.vlgmr.msra.gmra.mxu0 %v1401_v57  ;;  %1668 = vmatmul.mubr.bf16.vlgmr.msra.gmra.mxu1 %v1401_v57 }
 0x450   :  { %1925 = vmatpush1.bf16.msra.mxu0 %v3747_v3  ;;  %1966 = vmatpush1.bf16.msra.mxu1 %v3749_v63 }
 0x451   :  { %1926 = vmatprep.subr.bf16.mxu0 %v3755_v0  ;;  %1967 = vmatprep.subr.bf16.mxu1 %v3757_v1 }
 0x452   :  { %1956 = vmatprep.mubr.bf16.mxu0 %v3436_v4  ;;  %1997 = vmatprep.mubr.bf16.mxu1 %v3436_v4 }
 0x454   :  { %1927 = vmatpush1.bf16.msra.mxu0 %v3759_v62  ;;  %1968 = vmatpush1.bf16.msra.mxu1 %v3761_v34 }
 0x455   :  { %1928 = vmatprep.subr.bf16.mxu0 %v3767_v38  ;;  %1969 = vmatprep.subr.bf16.mxu1 %v3769_v39 }
 0x458   :  { %1929 = vmatpush1.bf16.msra.mxu0 %v3771_v40  ;;  %1970 = vmatpush1.bf16.msra.mxu1 %v3773_v41 }
 0x459   :  { %1930 = vmatprep.subr.bf16.mxu0 %v3779_v42  ;;  %1971 = vmatprep.subr.bf16.mxu1 %v3781_v44 }
 0x45c   :  { %1931 = vmatpush1.bf16.msra.mxu0 %v3783_v45  ;;  %1972 = vmatpush1.bf16.msra.mxu1 %v3785_v46 }
 0x45d   :  { %1932 = vmatprep.subr.bf16.mxu0 %v3793_v5  ;;  %1973 = vmatprep.subr.bf16.mxu1 %v3797_v7 }
 0x460   :  { %1933 = vmatpush1.bf16.msra.mxu0 %v3791_v47  ;;  %1974 = vmatpush1.bf16.msra.mxu1 %v3795_v6 }
 0x461   :  { %1934 = vmatprep.subr.bf16.mxu0 %v3799_v8  ;;  %1975 = vmatprep.subr.bf16.mxu1 %v3802_v9 }
 0x464   :  { %1935 = vmatpush1.bf16.msra.mxu0 %v3807_v10  ;;  %1976 = vmatpush1.bf16.msra.mxu1 %v3809_v11 }
 0x465   :  { %1936 = vmatprep.subr.bf16.mxu0 %v3813_v12  ;;  %1977 = vmatprep.subr.bf16.mxu1 %v3815_v13 }
 0x468   :  { %1937 = vmatpush1.bf16.msra.mxu0 %v3819_v14  ;;  %1978 = vmatpush1.bf16.msra.mxu1 %v3821_v15 }
 0x469   :  { %1938 = vmatprep.subr.bf16.mxu0 %v3825_v16  ;;  %1979 = vmatprep.subr.bf16.mxu1 %v3827_v17 }
 0x46c   :  { %1939 = vmatpush1.bf16.msra.mxu0 %v3831_v18  ;;  %1980 = vmatpush1.bf16.msra.mxu1 %v3833_v19 }
 0x46d   :  { %2254 = vmatprep.subr.bf16.mxu0 %v3743_v61  ;;  %2295 = vmatprep.subr.bf16.mxu1 %v3745_v2 }
 0x50f   :  { %v1628_v49 = vpop.f32.mrf.mxu0  ;;  %v1669_v50 = vpop.f32.mrf.mxu1 }
 0x510   :  { %v1676_v51 = vadd.f32 %v1628_v49, %v1397_v29  ;;  %v1678_v52 = vadd.f32 %v1669_v50, %v1399_v48 }
 0x511   :  { %v1630_v55 = vpop.f32.mrf.mxu0  ;;  %v1671_v56 = vpop.f32.mrf.mxu1 }
 0x512   :  { %v2952_v58 = vmul.f32 -1.442695, %v1676_v51  ;;  %v2954_v37 = vmul.f32 -1.442695, %v1678_v52  ;;  %v1677_v60 = vadd.f32 %v1630_v55, %v1398_v43  ;;  %v1679_v21 = vadd.f32 %v1671_v56, %v1400_v26  ;;  %v1717_v52 = vpop.permute.xlu0 %1716 }
 0x513   :  { %v1632_v20 = vpop.f32.mrf.mxu0  ;;  %v1673_v22 = vpop.f32.mrf.mxu1  ;;  %vm1718_vm12 = vcmp.eq.s32.totalorder %v1717_v52, 1 }
 0x514   :  { %3250 = vpow2.f32 %v2952_v58  ;;  %v2953_v23 = vmul.f32 -1.442695, %v1677_v60  ;;  %v2955_v30 = vmul.f32 -1.442695, %v1679_v21 }
 0x515   :  { %3252 = vpow2.f32 %v2954_v37  ;;  %v1633_v24 = vpop.f32.mrf.mxu0  ;;  %v1674_v25 = vpop.f32.mrf.mxu1 }
 0x516   :  { %3254 = vpow2.f32 %v2953_v23 }
 0x521   :  { %v3251_v27 = vpop.eup %3250 }
 0x522   :  { %v3253_v28 = vpop.eup %3252  ;;  %v1692_v53 = vadd.f32 1.0, %v3251_v27 }
 0x523   :  { %v3255_v32 = vpop.eup %3254  ;;  %v1694_v33 = vadd.f32 1.0, %v3253_v28 }
 0x524   :  { %v1693_v35 = vadd.f32 1.0, %v3255_v32 }
 0x525   :  { %3256 = vrcp.f32 %v1694_v33 }
 0x526   :  { %3258 = vpow2.f32 %v2955_v30 }
 0x527   :  { %3260 = vrcp.f32 %v1693_v35 }
 0x528   :  { %3262 = vrcp.f32 %v1692_v53 }
 0x532   :  { %v3257_v57 = vpop.eup %3256 }
 0x533   :  { %v3259_v54 = vpop.eup %3258  ;;  %v1704_v29 = vmul.f32 2.0, %v3257_v57 }
 0x534   :  { %v3261_v48 = vpop.eup %3260  ;;  %v1695_v50 = vadd.f32 1.0, %v3259_v54 }
 0x535   :  { %v2956_v43 = vadd.f32 -1.0, %v1704_v29  ;;  %v3263_v49 = vpop.eup %3262  ;;  %v1706_v51 = vmul.f32 %v3261_v48, %v3843_v31 }
 0x536   :  { %3264 = vrcp.f32 %v1695_v50 }
 0x537   :  { %v1707_v59 = vmul.f32 %v3263_v49, %v2956_v43 }
 0x539   :  { %v1708_v55 = vadd.f32 %v1707_v59, %v1706_v51 }
 0x53b   :  { %3266 = vtanh.f32 %v1708_v55  ;;  %v3886_v56 = vsel %vm1718_vm12, %v1708_v55, %v3843_v31  ;;  %v1725_v31 = vld [vmem:[#allocation6 + $0x50] sm:$0xff] }
 0x53c   :  { %v1727_v24 = vunpack.c.l.bf16 %v1725_v31  ;;  %v1728_v26 = vunpack.c.h.bf16 %v1725_v31 }
 0x543   :  { %v3265_v58 = vpop.eup %3264 }
 0x548   :  { %v3267_v37 = vpop.eup %3266 }
 0x549   :  { %v1710_v60 = vmul.f32 %v3267_v37, %v3265_v58 }
 0x54b   :  { %v3889_v20 = vsel %vm1718_vm12, %v1710_v60, %v3846_v36  ;;  %v1721_v22 = vsel %vm1718_vm12, %v1710_v60, 0.0  ;;  %v1726_v36 = vld [vmem:[#allocation6 + $0x58] sm:$0xff] }
 0x54c   :  { %1723 = vst [vmem:[#allocation11 + $0x20] sm:$0xff] %v1721_v22  ;;  %v1731_v23 = vpack.c.bf16 %v3889_v20, %v3889_v20  ;;  %v1729_v25 = vunpack.c.l.bf16 %v1726_v36  ;;  %v1730_v43 = vunpack.c.h.bf16 %v1726_v36 }
 0x54e   :  { %1957 = vmatmul.mubr.bf16.vlgmr.msra.gmra.mxu0 %v1731_v23  ;;  %1998 = vmatmul.mubr.bf16.vlgmr.msra.gmra.mxu1 %v1731_v23 }
 0x54f   :  { %2255 = vmatpush1.bf16.msra.mxu0 %v3747_v3  ;;  %2296 = vmatpush1.bf16.msra.mxu1 %v3749_v63 }
 0x550   :  { %2256 = vmatprep.subr.bf16.mxu0 %v3755_v0  ;;  %2297 = vmatprep.subr.bf16.mxu1 %v3757_v1 }
 0x551   :  { %2286 = vmatprep.mubr.bf16.mxu0 %v3436_v4  ;;  %2327 = vmatprep.mubr.bf16.mxu1 %v3436_v4 }
 0x553   :  { %2257 = vmatpush1.bf16.msra.mxu0 %v3759_v62  ;;  %2298 = vmatpush1.bf16.msra.mxu1 %v3761_v34 }
 0x554   :  { %2258 = vmatprep.subr.bf16.mxu0 %v3767_v38  ;;  %2299 = vmatprep.subr.bf16.mxu1 %v3769_v39 }
 0x557   :  { %2259 = vmatpush1.bf16.msra.mxu0 %v3771_v40  ;;  %2300 = vmatpush1.bf16.msra.mxu1 %v3773_v41 }
 0x558   :  { %2260 = vmatprep.subr.bf16.mxu0 %v3779_v42  ;;  %2301 = vmatprep.subr.bf16.mxu1 %v3781_v44 }
 0x55b   :  { %2261 = vmatpush1.bf16.msra.mxu0 %v3783_v45  ;;  %2302 = vmatpush1.bf16.msra.mxu1 %v3785_v46 }
 0x55c   :  { %2262 = vmatprep.subr.bf16.mxu0 %v3793_v5  ;;  %2303 = vmatprep.subr.bf16.mxu1 %v3797_v7 }
 0x55f   :  { %2263 = vmatpush1.bf16.msra.mxu0 %v3791_v47  ;;  %2304 = vmatpush1.bf16.msra.mxu1 %v3795_v6 }
 0x560   :  { %2264 = vmatprep.subr.bf16.mxu0 %v3799_v8  ;;  %2305 = vmatprep.subr.bf16.mxu1 %v3802_v9 }
 0x563   :  { %2265 = vmatpush1.bf16.msra.mxu0 %v3807_v10  ;;  %2306 = vmatpush1.bf16.msra.mxu1 %v3809_v11 }
 0x564   :  { %2266 = vmatprep.subr.bf16.mxu0 %v3813_v12  ;;  %2307 = vmatprep.subr.bf16.mxu1 %v3815_v13 }
 0x567   :  { %2267 = vmatpush1.bf16.msra.mxu0 %v3819_v14  ;;  %2308 = vmatpush1.bf16.msra.mxu1 %v3821_v15 }
 0x568   :  { %2268 = vmatprep.subr.bf16.mxu0 %v3825_v16  ;;  %2309 = vmatprep.subr.bf16.mxu1 %v3827_v17 }
 0x56b   :  { %2269 = vmatpush1.bf16.msra.mxu0 %v3831_v18  ;;  %2310 = vmatpush1.bf16.msra.mxu1 %v3833_v19 }
 0x56c   :  { %2584 = vmatprep.subr.bf16.mxu0 %v3743_v61  ;;  %2625 = vmatprep.subr.bf16.mxu1 %v3745_v2 }
 0x60e   :  { %v1958_v21 = vpop.f32.mrf.mxu0  ;;  %v1999_v27 = vpop.f32.mrf.mxu1 }
 0x60f   :  { %v2006_v28 = vadd.f32 %v1958_v21, %v1727_v24  ;;  %v2008_v30 = vadd.f32 %v1999_v27, %v1729_v25  ;;  %v2047_v27 = vpop.permute.xlu1 %2046 }
 0x610   :  { %v1960_v32 = vpop.f32.mrf.mxu0  ;;  %v2001_v33 = vpop.f32.mrf.mxu1  ;;  %vm2048_vm13 = vcmp.eq.s32.totalorder %v2047_v27, 1 }
 0x611   :  { %v2989_v35 = vmul.f32 -1.442695, %v2006_v28  ;;  %v2991_v53 = vmul.f32 -1.442695, %v2008_v30  ;;  %v2007_v57 = vadd.f32 %v1960_v32, %v1728_v26  ;;  %v2009_v49 = vadd.f32 %v2001_v33, %v1730_v43 }
 0x612   :  { %v1962_v54 = vpop.f32.mrf.mxu0  ;;  %v2003_v29 = vpop.f32.mrf.mxu1 }
 0x613   :  { %3268 = vpow2.f32 %v2989_v35  ;;  %v2990_v61 = vmul.f32 -1.442695, %v2007_v57  ;;  %v2992_v51 = vmul.f32 -1.442695, %v2009_v49 }
 0x614   :  { %3270 = vpow2.f32 %v2991_v53  ;;  %v1963_v2 = vpop.f32.mrf.mxu0  ;;  %v2004_v48 = vpop.f32.mrf.mxu1 }
 0x615   :  { %3272 = vpow2.f32 %v2990_v61  ;;  %v2377_v2 = vpop.permute.xlu0 %2376 }
 0x616   :  { %vm2378_vm14 = vcmp.eq.s32.totalorder %v2377_v2, 1 }
 0x620   :  { %v3269_v50 = vpop.eup %3268 }
 0x621   :  { %v3271_v59 = vpop.eup %3270  ;;  %v2022_v37 = vadd.f32 1.0, %v3269_v50 }
 0x622   :  { %v3273_v52 = vpop.eup %3272  ;;  %v2024_v55 = vadd.f32 1.0, %v3271_v59 }
 0x623   :  { %v2023_v58 = vadd.f32 1.0, %v3273_v52 }
 0x624   :  { %3274 = vrcp.f32 %v2024_v55 }
 0x625   :  { %3276 = vpow2.f32 %v2992_v51 }
 0x626   :  { %3278 = vrcp.f32 %v2023_v58 }
 0x627   :  { %3280 = vrcp.f32 %v2022_v37 }
 0x631   :  { %v3275_v60 = vpop.eup %3274 }
 0x632   :  { %v3277_v22 = vpop.eup %3276  ;;  %v2034_v23 = vmul.f32 2.0, %v3275_v60  ;;  %v2385_v60 = vld [vmem:[#allocation6 + $0x70] sm:$0xff] }
 0x633   :  { %v3279_v31 = vpop.eup %3278  ;;  %v2025_v26 = vadd.f32 1.0, %v3277_v22  ;;  %v2386_v22 = vld [vmem:[#allocation6 + $0x78] sm:$0xff] }
 0x634   :  { %v2993_v24 = vadd.f32 -1.0, %v2034_v23  ;;  %v3281_v25 = vpop.eup %3280  ;;  %v2036_v21 = vmul.f32 %v3279_v31, %v3886_v56  ;;  %v2387_v23 = vunpack.c.l.bf16 %v2385_v60  ;;  %v2389_v31 = vunpack.c.l.bf16 %v2386_v22 }
 0x635   :  { %3282 = vrcp.f32 %v2025_v26 }
 0x636   :  { %v2037_v36 = vmul.f32 %v3281_v25, %v2993_v24  ;;  %v2388_v24 = vunpack.c.h.bf16 %v2385_v60 }
 0x638   :  { %v2038_v28 = vadd.f32 %v2037_v36, %v2036_v21 }
 0x63a   :  { %3284 = vtanh.f32 %v2038_v28  ;;  %v3929_v30 = vsel %vm2048_vm13, %v2038_v28, %v3886_v56 }
 0x642   :  { %v3283_v32 = vpop.eup %3282 }
 0x647   :  { %v3285_v33 = vpop.eup %3284 }
 0x648   :  { %v2040_v35 = vmul.f32 %v3285_v33, %v3283_v32 }
 0x64a   :  { %v3932_v53 = vsel %vm2048_vm13, %v2040_v35, %v3889_v20  ;;  %v2051_v57 = vsel %vm2048_vm13, %v2040_v35, 0.0 }
 0x64b   :  { %2053 = vst [vmem:[#allocation11 + $0x28] sm:$0xff] %v2051_v57  ;;  %v2061_v54 = vpack.c.bf16 %v3932_v53, %v3932_v53 }
 0x64d   :  { %2287 = vmatmul.mubr.bf16.vlgmr.msra.gmra.mxu0 %v2061_v54  ;;  %2328 = vmatmul.mubr.bf16.vlgmr.msra.gmra.mxu1 %v2061_v54 }
 0x64e   :  { %2585 = vmatpush1.bf16.msra.mxu0 %v3747_v3  ;;  %2626 = vmatpush1.bf16.msra.mxu1 %v3749_v63  ;;  %v2056_v3 = vld [vmem:[#allocation6 + $0x68] sm:$0xff] }
 0x64f   :  { %2586 = vmatprep.subr.bf16.mxu0 %v3755_v0  ;;  %2627 = vmatprep.subr.bf16.mxu1 %v3757_v1  ;;  %v2059_v0 = vunpack.c.l.bf16 %v2056_v3 }
 0x650   :  { %2616 = vmatprep.mubr.bf16.mxu0 %v3436_v4  ;;  %2657 = vmatprep.mubr.bf16.mxu1 %v3436_v4  ;;  %v2055_v4 = vld [vmem:[#allocation6 + $0x60] sm:$0xff] }
 0x651   :  { %v2057_v63 = vunpack.c.l.bf16 %v2055_v4  ;;  %v2058_v1 = vunpack.c.h.bf16 %v2055_v4 }
 0x652   :  { %2587 = vmatpush1.bf16.msra.mxu0 %v3759_v62  ;;  %2628 = vmatpush1.bf16.msra.mxu1 %v3761_v34 }
 0x653   :  { %2588 = vmatprep.subr.bf16.mxu0 %v3767_v38  ;;  %2629 = vmatprep.subr.bf16.mxu1 %v3769_v39 }
 0x656   :  { %2589 = vmatpush1.bf16.msra.mxu0 %v3771_v40  ;;  %2630 = vmatpush1.bf16.msra.mxu1 %v3773_v41 }
 0x657   :  { %2590 = vmatprep.subr.bf16.mxu0 %v3779_v42  ;;  %2631 = vmatprep.subr.bf16.mxu1 %v3781_v44 }
 0x65a   :  { %2591 = vmatpush1.bf16.msra.mxu0 %v3783_v45  ;;  %2632 = vmatpush1.bf16.msra.mxu1 %v3785_v46 }
 0x65b   :  { %2592 = vmatprep.subr.bf16.mxu0 %v3793_v5  ;;  %2633 = vmatprep.subr.bf16.mxu1 %v3797_v7 }
 0x65e   :  { %2593 = vmatpush1.bf16.msra.mxu0 %v3791_v47  ;;  %2634 = vmatpush1.bf16.msra.mxu1 %v3795_v6 }
 0x65f   :  { %2594 = vmatprep.subr.bf16.mxu0 %v3799_v8  ;;  %2635 = vmatprep.subr.bf16.mxu1 %v3802_v9  ;;  %v2060_v8 = vunpack.c.h.bf16 %v2056_v3  ;;  %v2390_v3 = vunpack.c.h.bf16 %v2386_v22 }
 0x662   :  { %2595 = vmatpush1.bf16.msra.mxu0 %v3807_v10  ;;  %2636 = vmatpush1.bf16.msra.mxu1 %v3809_v11 }
 0x663   :  { %2596 = vmatprep.subr.bf16.mxu0 %v3813_v12  ;;  %2637 = vmatprep.subr.bf16.mxu1 %v3815_v13 }
 0x666   :  { %2597 = vmatpush1.bf16.msra.mxu0 %v3819_v14  ;;  %2638 = vmatpush1.bf16.msra.mxu1 %v3821_v15 }
 0x667   :  { %2598 = vmatprep.subr.bf16.mxu0 %v3825_v16  ;;  %2639 = vmatprep.subr.bf16.mxu1 %v3827_v17 }
 0x66a   :  { %2599 = vmatpush1.bf16.msra.mxu0 %v3831_v18  ;;  %2640 = vmatpush1.bf16.msra.mxu1 %v3833_v19 }
 0x70d   :  { %v2288_v62 = vpop.f32.mrf.mxu0  ;;  %v2329_v34 = vpop.f32.mrf.mxu1 }
 0x70e   :  { %v2336_v38 = vadd.f32 %v2288_v62, %v2057_v63  ;;  %v2338_v39 = vadd.f32 %v2329_v34, %v2059_v0 }
 0x70f   :  { %v2290_v40 = vpop.f32.mrf.mxu0  ;;  %v2331_v41 = vpop.f32.mrf.mxu1 }
 0x710   :  { %v3026_v42 = vmul.f32 -1.442695, %v2336_v38  ;;  %v3028_v44 = vmul.f32 -1.442695, %v2338_v39  ;;  %v2337_v45 = vadd.f32 %v2290_v40, %v2058_v1  ;;  %v2339_v9 = vadd.f32 %v2331_v41, %v2060_v8 }
 0x711   :  { %v2292_v46 = vpop.f32.mrf.mxu0  ;;  %v2333_v47 = vpop.f32.mrf.mxu1 }
 0x712   :  { %3286 = vpow2.f32 %v3026_v42  ;;  %v3027_v5 = vmul.f32 -1.442695, %v2337_v45  ;;  %v3029_v12 = vmul.f32 -1.442695, %v2339_v9 }
 0x713   :  { %3288 = vpow2.f32 %v3028_v44  ;;  %v2293_v6 = vpop.f32.mrf.mxu0  ;;  %v2334_v7 = vpop.f32.mrf.mxu1 }
 0x714   :  { %3290 = vpow2.f32 %v3027_v5  ;;  %v2707_v6 = vpop.permute.xlu1 %2706 }
 0x715   :  { %vm2708_vm15 = vcmp.eq.s32.totalorder %v2707_v6, 1 }
 0x71f   :  { %v3287_v10 = vpop.eup %3286 }
 0x720   :  { %v3289_v11 = vpop.eup %3288  ;;  %v2352_v16 = vadd.f32 1.0, %v3287_v10 }
 0x721   :  { %v3291_v13 = vpop.eup %3290  ;;  %v2354_v14 = vadd.f32 1.0, %v3289_v11 }
 0x722   :  { %v2353_v15 = vadd.f32 1.0, %v3291_v13 }
 0x723   :  { %3292 = vrcp.f32 %v2354_v14 }
 0x724   :  { %3294 = vpow2.f32 %v3029_v12 }
 0x725   :  { %3296 = vrcp.f32 %v2353_v15 }
 0x726   :  { %3298 = vrcp.f32 %v2352_v16 }
 0x730   :  { %v3293_v17 = vpop.eup %3292 }
 0x731   :  { %v3295_v18 = vpop.eup %3294  ;;  %v2364_v19 = vmul.f32 2.0, %v3293_v17 }
 0x732   :  { %v3297_v56 = vpop.eup %3296  ;;  %v2355_v61 = vadd.f32 1.0, %v3295_v18 }
 0x733   :  { %v3030_v20 = vadd.f32 -1.0, %v2364_v19  ;;  %v3299_v29 = vpop.eup %3298  ;;  %v2366_v43 = vmul.f32 %v3297_v56, %v3929_v30 }
 0x734   :  { %3300 = vrcp.f32 %v2355_v61 }
 0x735   :  { %v2367_v48 = vmul.f32 %v3299_v29, %v3030_v20 }
 0x737   :  { %v2368_v49 = vadd.f32 %v2367_v48, %v2366_v43 }
 0x739   :  { %3302 = vtanh.f32 %v2368_v49  ;;  %v2380_v50 = vsel %vm2378_vm14, %v2368_v49, %v3929_v30 }
 0x741   :  { %v3301_v59 = vpop.eup %3300 }
 0x746   :  { %v3303_v51 = vpop.eup %3302 }
 0x747   :  { %v2370_v52 = vmul.f32 %v3303_v51, %v3301_v59 }
 0x749   :  { %v2379_v55 = vsel %vm2378_vm14, %v2370_v52, %v3932_v53  ;;  %v2381_v58 = vsel %vm2378_vm14, %v2370_v52, 0.0 }
 0x74a   :  { %2383 = vst [vmem:[#allocation11 + $0x30] sm:$0xff] %v2381_v58  ;;  %v2391_v37 = vpack.c.bf16 %v2379_v55, %v2379_v55 }
 0x74c   :  { %2617 = vmatmul.mubr.bf16.vlgmr.msra.gmra.mxu0 %v2391_v37  ;;  %2658 = vmatmul.mubr.bf16.vlgmr.msra.gmra.mxu1 %v2391_v37 }
 0x80c   :  { %v2618_v25 = vpop.f32.mrf.mxu0  ;;  %v2659_v26 = vpop.f32.mrf.mxu1 }
 0x80d   :  { %v2666_v36 = vadd.f32 %v2618_v25, %v2387_v23  ;;  %v2668_v21 = vadd.f32 %v2659_v26, %v2389_v31 }
 0x80e   :  { %v2620_v27 = vpop.f32.mrf.mxu0  ;;  %v2661_v28 = vpop.f32.mrf.mxu1 }
 0x80f   :  { %v3063_v30 = vmul.f32 -1.442695, %v2666_v36  ;;  %v3065_v32 = vmul.f32 -1.442695, %v2668_v21  ;;  %v2667_v33 = vadd.f32 %v2620_v27, %v2388_v24  ;;  %v2669_v63 = vadd.f32 %v2661_v28, %v2390_v3 }
 0x810   :  { %v2622_v35 = vpop.f32.mrf.mxu0  ;;  %v2663_v53 = vpop.f32.mrf.mxu1 }
 0x811   :  { %3304 = vpow2.f32 %v3063_v30  ;;  %v3064_v57 = vmul.f32 -1.442695, %v2667_v33  ;;  %v3066_v62 = vmul.f32 -1.442695, %v2669_v63 }
 0x812   :  { %3306 = vpow2.f32 %v3065_v32  ;;  %v2623_v54 = vpop.f32.mrf.mxu0  ;;  %v2664_v4 = vpop.f32.mrf.mxu1 }
 0x813   :  { %3308 = vpow2.f32 %v3064_v57 }
 0x81e   :  { %v3305_v0 = vpop.eup %3304 }
 0x81f   :  { %v3307_v1 = vpop.eup %3306  ;;  %v2682_v40 = vadd.f32 1.0, %v3305_v0 }
 0x820   :  { %v3309_v34 = vpop.eup %3308  ;;  %v2684_v38 = vadd.f32 1.0, %v3307_v1 }
 0x821   :  { %v2683_v39 = vadd.f32 1.0, %v3309_v34 }
 0x822   :  { %3310 = vrcp.f32 %v2684_v38 }
 0x823   :  { %3312 = vpow2.f32 %v3066_v62 }
 0x824   :  { %3314 = vrcp.f32 %v2683_v39 }
 0x825   :  { %3316 = vrcp.f32 %v2682_v40 }
 0x82f   :  { %v3311_v41 = vpop.eup %3310 }
 0x830   :  { %v3313_v42 = vpop.eup %3312  ;;  %v2694_v44 = vmul.f32 2.0, %v3311_v41 }
 0x831   :  { %v3315_v45 = vpop.eup %3314  ;;  %v2685_v5 = vadd.f32 1.0, %v3313_v42 }
 0x832   :  { %v3067_v46 = vadd.f32 -1.0, %v2694_v44  ;;  %v3317_v47 = vpop.eup %3316  ;;  %v2696_v8 = vmul.f32 %v3315_v45, %v2380_v50 }
 0x833   :  { %3318 = vrcp.f32 %v2685_v5 }
 0x834   :  { %v2697_v7 = vmul.f32 %v3317_v47, %v3067_v46 }
 0x836   :  { %v2698_v9 = vadd.f32 %v2697_v7, %v2696_v8 }
 0x838   :  { %3320 = vtanh.f32 %v2698_v9  ;;  %v2710_v10 = vsel %vm2708_vm15, %v2698_v9, %v2380_v50 }
 0x839   :  { %2715 = vst [vmem:[#allocation3] sm:$0xff] %v2710_v10 }
 0x840   :  { %v3319_v11 = vpop.eup %3318 }
 0x845   :  { %v3321_v12 = vpop.eup %3320 }
 0x846   :  { %v2700_v13 = vmul.f32 %v3321_v12, %v3319_v11 }
 0x848   :  { %v2709_v14 = vsel %vm2708_vm15, %v2700_v13, %v2379_v55  ;;  %v2711_v15 = vsel %vm2708_vm15, %v2700_v13, 0.0 }
 0x849   :  { %2713 = vst [vmem:[#allocation11 + $0x38] sm:$0xff] %v2711_v15  ;;  %2714 = vst [vmem:[#allocation2] sm:$0xff] %v2709_v14 }
 0x84a PF:  { %v2721_v17 = vld [vmem:[#allocation3] sm:$0xff]  ;;  %s3437_s3 = smov [#allocation12]   ;;  %s3438_s13 = smov [#allocation11]  }
 0x84b   :  { %2722 = vst [vmem:[#allocation14] sm:$0xff] %v2721_v17  ;;  %s2741_s12 = sshll.u32 %s3437_s3, 4  ;;  %s2728_s14 = sshll.u32 %s3438_s13, 4  ;;  %s2742_s12 = int_to_ptr.vmem [resolvable:$true] %s2741_s12  ;;  %s2729_s14 = int_to_ptr.vmem [resolvable:$true] %s2728_s14 }
 0x84c   :  { %s3362_s15 = scalar_lea.vmem %s2742_s12, 128  ;;  %p3367_p13 = scmp.lt.s32.totalorder %s2742_s12, %s2742_s12 }
 0x84d   :  { %p3363_p12 = scmp.ne.s32.totalorder %s2742_s12, %s3362_s15  ;;  %p3368_p0 = scmp.lt.s32.totalorder %s3362_s15, %s3362_s15 }
 0x84f   :  { %p3369_p1 = por %p3368_p0, %p3367_p13 }
 0x850   :  { %v2719_v16 = vld [vmem:[#allocation2] sm:$0xff] }
 0x851   :  { %2720 = vst [vmem:[#allocation12] sm:$0xff] %v2719_v16  ;;  %p3370_p2 = pnand %p3369_p1, %p3363_p12 }
 0x853   :  { %3373 = shalt.err (!%p3370_p2)
}
 0x854   :  { %2744 = dma.vmem_to_hbm [thread:$0]  %s2742_s12, 128, %s3985_s5, [#allocation13]  }
 0x855   :  { %s3382_s18 = scalar_lea.vmem %s2729_s14, 1024  ;;  %p3387_p4 = scmp.lt.s32.totalorder %s2729_s14, %s2729_s14 }
 0x856   :  { %p3383_p3 = scmp.ne.s32.totalorder %s2729_s14, %s3382_s18  ;;  %p3388_p5 = scmp.lt.s32.totalorder %s3382_s18, %s3382_s18 }
 0x858   :  { %p3389_p6 = por %p3388_p5, %p3387_p4 }
 0x85a   :  { %p3390_p7 = pnand %p3389_p6, %p3383_p3 }
 0x85c   :  { %3393 = shalt.err (!%p3390_p7)
}
 0x85d   :  { %s3439_s19 = smov 128   ;;  %s3440_s20 = smov 8  }
 0x85e   :  { %2734 = dma.vmem_to_hbm [thread:$0]  %s2729_s14, 1024, %s3984_s4, [#allocation8], %s3439_s19, %s3439_s19, %s3440_s20  }
 0x85f   :  { %s3441_s23 = smov [#allocation14]  }
 0x860   :  { %s2751_s24 = sshll.u32 %s3441_s23, 4  ;;  %s2752_s24 = int_to_ptr.vmem [resolvable:$true] %s2751_s24 }
 0x861   :  { %s3402_s25 = scalar_lea.vmem %s2752_s24, 128  ;;  %p3407_p9 = scmp.lt.s32.totalorder %s2752_s24, %s2752_s24 }
 0x862   :  { %p3403_p8 = scmp.ne.s32.totalorder %s2752_s24, %s3402_s25  ;;  %p3408_p10 = scmp.lt.s32.totalorder %s3402_s25, %s3402_s25 }
 0x864   :  { %p3409_p11 = por %p3408_p10, %p3407_p9 }
 0x866   :  { %p3410_p12 = pnand %p3409_p11, %p3403_p8 }
 0x868   :  { %3413 = shalt.err (!%p3410_p12)
}
 0x869   :  { %2754 = dma.vmem_to_hbm [thread:$0]  %s2752_s24, 128, %s3986_s6, [#allocation13]  }
 0x86a   :  { %3426 = dma.done.wait [#allocation8], 1024  }
 0x86b   :  { %3427 = vsyncadd [#allocation8], 4294966272 }
 0x86c   :  { %3428 = dma.done.wait [#allocation13], 256  }
 0x86d   :  { %3429 = vsyncadd [#allocation13], 4294967040 }
 0x86e   :  { %2764 = vsyncpa [#allocation7], 1 }
 0x86f   :  { %2765 = vsyncpa [#allocation10], 1 }
 0x870   :  { %2766 = vsyncpa [#allocation8], 1 }
 0x871   :  { %2767 = vsyncpa [#allocation13], 1 }

</bundles_post_ra>
